<compile_context>
chip_gen: v7x
topology: tpu7x:2x2x1
jax: 0.10.0
libtpu: 0.0.40
codegen_flags: <defaults>
</compile_context>

<pallas_src>
import jax
import jax.numpy as jnp
from jax.experimental import pallas as pl
from jax.experimental.pallas import tpu as pltpu

# ---------------------------------------------------------------------------
D_IN = 768
FFN_DIMS = [(768, 384, 192), (192, 192, 192), (192, 96, 48)]
D_OUT = FFN_DIMS[-1][-1]       # 48 real output columns
D_OUT_PAD = 128                # lane-dense padded output width
D_HID3_PAD = 128               # layer-3 hidden 96 -> 128 lane padding


def ligand_projection_kernel(
    x_ref,
    w1a_ref, b1a_ref, w1b_ref, b1b_ref,
    w2a_ref, b2a_ref, w2b_ref, b2b_ref,
    w3a_ref, b3a_ref, w3b_ref, b3b_ref,
    o_ref,
):
    """Fused 3xFFN on one (TM, 768) row tile.

    MXU matmuls take bf16 operands with f32 accumulation; bias adds and ReLU
    stay f32 on the VPU.  The f32->bf16 cast of x happens here so the wrapper
    never materializes a bf16 copy of x in HBM.
    """

    def ffn(h_bf16, w_a, b_a, w_b, b_b):
        h = jnp.dot(h_bf16, w_a[...], preferred_element_type=jnp.float32)
        h = jnp.maximum(h + b_a[...], 0.0)                      # f32 ReLU (VPU)
        h = jnp.dot(h.astype(jnp.bfloat16), w_b[...],
                    preferred_element_type=jnp.float32)
        return h + b_b[...]                                     # f32 bias add

    h = x_ref[...].astype(jnp.bfloat16)                         # in-kernel cast
    h = ffn(h, w1a_ref, b1a_ref, w1b_ref, b1b_ref)
    h = ffn(h.astype(jnp.bfloat16), w2a_ref, b2a_ref, w2b_ref, b2b_ref)
    h = ffn(h.astype(jnp.bfloat16), w3a_ref, b3a_ref, w3b_ref, b3b_ref)
    o_ref[...] = h.astype(o_ref.dtype)


# ---------------------------------------------------------------------------
def _round_up(v, m):
    return (v + m - 1) // m * m


def _choose_tm(rows):
    # MXU-bound chain: a big M per tile amortizes the ~0.35us per-grid-step
    # overhead and keeps the MXU streaming, but keep >= 2 tiles when rows
    # permit so both v7x TensorCores get work on the "parallel" grid axis.
    if rows >= 2 * 128:
        return min(512, _round_up(pl.cdiv(rows, 2), 128))
    return _round_up(max(rows, 8), 8)


def prepare_params(params):
    """One-time weight prep (call once, NOT per step).

    bf16 weights (MXU), f32 biases (VPU).  Layer 3 is zero-padded to lane
    width: hidden 96->128 and output 48->128, which changes nothing
    numerically (extra hidden units are ReLU(0)=0 and feed zero rows of w3b;
    extra output columns are sliced off by the wrapper)."""
    (w1a, b1a, w1b, b1b), (w2a, b2a, w2b, b2b), (w3a, b3a, w3b, b3b) = params
    w3a = jnp.pad(w3a, ((0, 0), (0, D_HID3_PAD - 96)))
    b3a = jnp.pad(b3a, ((0, 0), (0, D_HID3_PAD - 96)))
    w3b = jnp.pad(w3b, ((0, D_HID3_PAD - 96), (0, D_OUT_PAD - D_OUT)))
    b3b = jnp.pad(b3b, ((0, 0), (0, D_OUT_PAD - D_OUT)))

    prepped = []
    for (w_a, b_a, w_b, b_b) in ((w1a, b1a, w1b, b1b),
                                 (w2a, b2a, w2b, b2b),
                                 (w3a, b3a, w3b, b3b)):
        prepped.extend([w_a.astype(jnp.bfloat16), b_a.astype(jnp.float32),
                        w_b.astype(jnp.bfloat16), b_b.astype(jnp.float32)])
    return tuple(prepped)


@jax.jit
def ligand_projection(x, prepared_weights):
    """x: [B, S, 768] float32 -> [B, S, 48] float32.

    prepared_weights: output of prepare_params()."""
    B, S, _ = x.shape
    rows = B * S
    tm = _choose_tm(rows)
    n_tiles = pl.cdiv(rows, tm)

    # No cast, no pad: the kernel casts, and the ragged last row-tile (if any)
    # is handled by Pallas (masked tail writes; tail rows never materialize).
    x2d = x.reshape(rows, D_IN)

    # Whole-array blocks, same block index every grid step (stay resident).
    # TODO(synk): pipeline_mode=pl.Buffered(1) would drop the redundant second
    # weight buffer (~1 MiB VMEM); left at default buffering for compile safety.
    weight_specs = [pl.BlockSpec(w.shape, lambda i: (0, 0))
                    for w in prepared_weights]

    flops_per_row = 2 * sum(a * b + b * c for (a, b, c) in FFN_DIMS)
    weight_bytes = sum(int(w.size) * w.dtype.itemsize for w in prepared_weights)
    cost = pl.CostEstimate(
        flops=flops_per_row * rows,
        transcendentals=0,
        bytes_accessed=rows * (D_IN + D_OUT_PAD) * 4 + weight_bytes,
    )

    out2d = pl.pallas_call(
        ligand_projection_kernel,
        out_shape=jax.ShapeDtypeStruct((rows, D_OUT_PAD), jnp.float32),
        grid_spec=pltpu.PrefetchScalarGridSpec(
            num_scalar_prefetch=0,
            grid=(n_tiles,),
            in_specs=[pl.BlockSpec((tm, D_IN), lambda i: (i, 0))] + weight_specs,
            out_specs=pl.BlockSpec((tm, D_OUT_PAD), lambda i: (i, 0)),
        ),
        compiler_params=pltpu.CompilerParams(
            dimension_semantics=("parallel",),
            vmem_limit_bytes=16 * 1024 * 1024,
        ),
        cost_estimate=cost,
    )(x2d, *prepared_weights)

    # TODO(synk): verify in HLO that this column slice fuses into the
    # downstream consumer; if not, hand the (rows, 128) slab to the consumer.
    return out2d[:, :D_OUT].reshape(B, S, D_OUT)


# ---------------------------------------------------------------------------
def init_params(key):
    """Deterministic synthetic weights.  W stored as (in, out), bias as (1, out)."""
    params = []
    for (d_in, d_hid, d_out) in FFN_DIMS:
        key, k1, k2, k3, k4 = jax.random.split(key, 5)
        scale1 = 1.0 / jnp.sqrt(d_in)
        scale2 = 1.0 / jnp.sqrt(d_hid)
        w_a = jax.random.uniform(k1, (d_in, d_hid), jnp.float32, -scale1, scale1)
        b_a = jax.random.uniform(k2, (1, d_hid), jnp.float32, -scale1, scale1)
        w_b = jax.random.uniform(k3, (d_hid, d_out), jnp.float32, -scale2, scale2)
        b_b = jax.random.uniform(k4, (1, d_out), jnp.float32, -scale2, scale2)
        params.append((w_a, b_a, w_b, b_b))
    return params


def reference_forward(x, params):
    """Pure-JAX reference mirroring the kernel numerics (bf16 dots, f32 acc)."""
    B, S, _ = x.shape
    h = x.reshape(B * S, D_IN).astype(jnp.bfloat16)
    for (w_a, b_a, w_b, b_b) in params:
        h = jnp.dot(h, w_a.astype(jnp.bfloat16),
                    preferred_element_type=jnp.float32) + b_a
        h = jnp.maximum(h, 0.0)
        h = jnp.dot(h.astype(jnp.bfloat16), w_b.astype(jnp.bfloat16),
                    preferred_element_type=jnp.float32) + b_b
    return h.reshape(B, S, D_OUT)


if __name__ == "__main__":
    key = jax.random.PRNGKey(0)
    key, kx = jax.random.split(key)

    B, S = 2, 8  # small shapes: 16 token rows, feature dim 768
    x = jax.random.normal(kx, (B, S, D_IN), dtype=jnp.float32)
    params = init_params(key)
    prepared = prepare_params(params)      # one-time weight prep

    out = ligand_projection(x, prepared)
    out = jax.block_until_ready(out)

    ref = reference_forward(x, params)
    assert out.shape == (B, S, D_OUT), out.shape
    assert jnp.allclose(out, ref, atol=1e-2, rtol=1e-2), "mismatch vs reference"

    print("KERNEL_OK")
</pallas_src>

<mosaic_0001>
module attributes {stable_mosaic.version = 11 : i64} {
  func.func @ligand_projection_kernel(%arg0: i32, %arg1: memref<16x768xf32, #tpu.memory_space<vmem>>, %arg2: memref<768x384xbf16, #tpu.memory_space<vmem>>, %arg3: memref<1x384xf32, #tpu.memory_space<vmem>>, %arg4: memref<384x192xbf16, #tpu.memory_space<vmem>>, %arg5: memref<1x192xf32, #tpu.memory_space<vmem>>, %arg6: memref<192x192xbf16, #tpu.memory_space<vmem>>, %arg7: memref<1x192xf32, #tpu.memory_space<vmem>>, %arg8: memref<192x192xbf16, #tpu.memory_space<vmem>>, %arg9: memref<1x192xf32, #tpu.memory_space<vmem>>, %arg10: memref<192x128xbf16, #tpu.memory_space<vmem>>, %arg11: memref<1x128xf32, #tpu.memory_space<vmem>>, %arg12: memref<128x128xbf16, #tpu.memory_space<vmem>>, %arg13: memref<1x128xf32, #tpu.memory_space<vmem>>, %arg14: memref<16x128xf32, #tpu.memory_space<vmem>>) attributes {dimension_semantics = [#tpu.dimension_semantics<parallel>], iteration_bounds = array<i64: 1>, scalar_prefetch = 0 : i64, scratch_operands = 0 : i64, tpu.core_type = #tpu.core_type<tc>, window_params = [{transform_indices = @transform_0, window_bounds = array<i64: 16, 768>}, {pipeline_mode = #tpu.pipeline_mode<synchronous>, transform_indices = @transform_1, window_bounds = array<i64: 768, 384>}, {pipeline_mode = #tpu.pipeline_mode<synchronous>, transform_indices = @transform_2, window_bounds = array<i64: 1, 384>}, {pipeline_mode = #tpu.pipeline_mode<synchronous>, transform_indices = @transform_3, window_bounds = array<i64: 384, 192>}, {pipeline_mode = #tpu.pipeline_mode<synchronous>, transform_indices = @transform_4, window_bounds = array<i64: 1, 192>}, {pipeline_mode = #tpu.pipeline_mode<synchronous>, transform_indices = @transform_5, window_bounds = array<i64: 192, 192>}, {pipeline_mode = #tpu.pipeline_mode<synchronous>, transform_indices = @transform_6, window_bounds = array<i64: 1, 192>}, {pipeline_mode = #tpu.pipeline_mode<synchronous>, transform_indices = @transform_7, window_bounds = array<i64: 192, 192>}, {pipeline_mode = #tpu.pipeline_mode<synchronous>, transform_indices = @transform_8, window_bounds = array<i64: 1, 192>}, {pipeline_mode = #tpu.pipeline_mode<synchronous>, transform_indices = @transform_9, window_bounds = array<i64: 192, 128>}, {pipeline_mode = #tpu.pipeline_mode<synchronous>, transform_indices = @transform_10, window_bounds = array<i64: 1, 128>}, {pipeline_mode = #tpu.pipeline_mode<synchronous>, transform_indices = @transform_11, window_bounds = array<i64: 128, 128>}, {pipeline_mode = #tpu.pipeline_mode<synchronous>, transform_indices = @transform_12, window_bounds = array<i64: 1, 128>}, {transform_indices = @transform_13, window_bounds = array<i64: 16, 128>}]} {
    %c0 = arith.constant 0 : index
    %c0_0 = arith.constant 0 : index
    %0 = vector.load %arg1[%c0, %c0_0] : memref<16x768xf32, #tpu.memory_space<vmem>>, vector<16x768xf32>
    %1 = arith.truncf %0 : vector<16x768xf32> to vector<16x768xbf16>
    %c0_1 = arith.constant 0 : index
    %c0_2 = arith.constant 0 : index
    %2 = vector.load %arg2[%c0_1, %c0_2] : memref<768x384xbf16, #tpu.memory_space<vmem>>, vector<768x384xbf16>
    %cst = arith.constant dense<0.000000e+00> : vector<16x384xf32>
    %3 = tpu.matmul %1, %2, %cst {dimension_numbers = #tpu.dot_dimension_numbers<[1], [0], [0], [1], [0, 0, 1, 1], [], []>} : vector<16x768xbf16>, vector<768x384xbf16>, vector<16x384xf32> -> vector<16x384xf32>
    %c0_3 = arith.constant 0 : index
    %c0_4 = arith.constant 0 : index
    %4 = vector.load %arg3[%c0_3, %c0_4] : memref<1x384xf32, #tpu.memory_space<vmem>>, vector<1x384xf32>
    %5 = vector.broadcast %4 : vector<1x384xf32> to vector<16x384xf32>
    %6 = arith.addf %3, %5 : vector<16x384xf32>
    %cst_5 = arith.constant 0.000000e+00 : f32
    %7 = vector.broadcast %cst_5 : f32 to vector<16x384xf32>
    %8 = arith.maximumf %6, %7 : vector<16x384xf32>
    %9 = arith.truncf %8 : vector<16x384xf32> to vector<16x384xbf16>
    %c0_6 = arith.constant 0 : index
    %c0_7 = arith.constant 0 : index
    %10 = vector.load %arg4[%c0_6, %c0_7] : memref<384x192xbf16, #tpu.memory_space<vmem>>, vector<384x192xbf16>
    %cst_8 = arith.constant dense<0.000000e+00> : vector<16x192xf32>
    %11 = tpu.matmul %9, %10, %cst_8 {dimension_numbers = #tpu.dot_dimension_numbers<[1], [0], [0], [1], [0, 0, 1, 1], [], []>} : vector<16x384xbf16>, vector<384x192xbf16>, vector<16x192xf32> -> vector<16x192xf32>
    %c0_9 = arith.constant 0 : index
    %c0_10 = arith.constant 0 : index
    %12 = vector.load %arg5[%c0_9, %c0_10] : memref<1x192xf32, #tpu.memory_space<vmem>>, vector<1x192xf32>
    %13 = vector.broadcast %12 : vector<1x192xf32> to vector<16x192xf32>
    %14 = arith.addf %11, %13 : vector<16x192xf32>
    %15 = arith.truncf %14 : vector<16x192xf32> to vector<16x192xbf16>
    %c0_11 = arith.constant 0 : index
    %c0_12 = arith.constant 0 : index
    %16 = vector.load %arg6[%c0_11, %c0_12] : memref<192x192xbf16, #tpu.memory_space<vmem>>, vector<192x192xbf16>
    %cst_13 = arith.constant dense<0.000000e+00> : vector<16x192xf32>
    %17 = tpu.matmul %15, %16, %cst_13 {dimension_numbers = #tpu.dot_dimension_numbers<[1], [0], [0], [1], [0, 0, 1, 1], [], []>} : vector<16x192xbf16>, vector<192x192xbf16>, vector<16x192xf32> -> vector<16x192xf32>
    %c0_14 = arith.constant 0 : index
    %c0_15 = arith.constant 0 : index
    %18 = vector.load %arg7[%c0_14, %c0_15] : memref<1x192xf32, #tpu.memory_space<vmem>>, vector<1x192xf32>
    %19 = vector.broadcast %18 : vector<1x192xf32> to vector<16x192xf32>
    %20 = arith.addf %17, %19 : vector<16x192xf32>
    %cst_16 = arith.constant 0.000000e+00 : f32
    %21 = vector.broadcast %cst_16 : f32 to vector<16x192xf32>
    %22 = arith.maximumf %20, %21 : vector<16x192xf32>
    %23 = arith.truncf %22 : vector<16x192xf32> to vector<16x192xbf16>
    %c0_17 = arith.constant 0 : index
    %c0_18 = arith.constant 0 : index
    %24 = vector.load %arg8[%c0_17, %c0_18] : memref<192x192xbf16, #tpu.memory_space<vmem>>, vector<192x192xbf16>
    %cst_19 = arith.constant dense<0.000000e+00> : vector<16x192xf32>
    %25 = tpu.matmul %23, %24, %cst_19 {dimension_numbers = #tpu.dot_dimension_numbers<[1], [0], [0], [1], [0, 0, 1, 1], [], []>} : vector<16x192xbf16>, vector<192x192xbf16>, vector<16x192xf32> -> vector<16x192xf32>
    %c0_20 = arith.constant 0 : index
    %c0_21 = arith.constant 0 : index
    %26 = vector.load %arg9[%c0_20, %c0_21] : memref<1x192xf32, #tpu.memory_space<vmem>>, vector<1x192xf32>
    %27 = vector.broadcast %26 : vector<1x192xf32> to vector<16x192xf32>
    %28 = arith.addf %25, %27 : vector<16x192xf32>
    %29 = arith.truncf %28 : vector<16x192xf32> to vector<16x192xbf16>
    %c0_22 = arith.constant 0 : index
    %c0_23 = arith.constant 0 : index
    %30 = vector.load %arg10[%c0_22, %c0_23] : memref<192x128xbf16, #tpu.memory_space<vmem>>, vector<192x128xbf16>
    %cst_24 = arith.constant dense<0.000000e+00> : vector<16x128xf32>
    %31 = tpu.matmul %29, %30, %cst_24 {dimension_numbers = #tpu.dot_dimension_numbers<[1], [0], [0], [1], [0, 0, 1, 1], [], []>} : vector<16x192xbf16>, vector<192x128xbf16>, vector<16x128xf32> -> vector<16x128xf32>
    %c0_25 = arith.constant 0 : index
    %c0_26 = arith.constant 0 : index
    %32 = vector.load %arg11[%c0_25, %c0_26] : memref<1x128xf32, #tpu.memory_space<vmem>>, vector<1x128xf32>
    %33 = vector.broadcast %32 : vector<1x128xf32> to vector<16x128xf32>
    %34 = arith.addf %31, %33 : vector<16x128xf32>
    %cst_27 = arith.constant 0.000000e+00 : f32
    %35 = vector.broadcast %cst_27 : f32 to vector<16x128xf32>
    %36 = arith.maximumf %34, %35 : vector<16x128xf32>
    %37 = arith.truncf %36 : vector<16x128xf32> to vector<16x128xbf16>
    %c0_28 = arith.constant 0 : index
    %c0_29 = arith.constant 0 : index
    %38 = vector.load %arg12[%c0_28, %c0_29] : memref<128x128xbf16, #tpu.memory_space<vmem>>, vector<128x128xbf16>
    %cst_30 = arith.constant dense<0.000000e+00> : vector<16x128xf32>
    %39 = tpu.matmul %37, %38, %cst_30 {dimension_numbers = #tpu.dot_dimension_numbers<[1], [0], [0], [1], [0, 0, 1, 1], [], []>} : vector<16x128xbf16>, vector<128x128xbf16>, vector<16x128xf32> -> vector<16x128xf32>
    %c0_31 = arith.constant 0 : index
    %c0_32 = arith.constant 0 : index
    %40 = vector.load %arg13[%c0_31, %c0_32] : memref<1x128xf32, #tpu.memory_space<vmem>>, vector<1x128xf32>
    %41 = vector.broadcast %40 : vector<1x128xf32> to vector<16x128xf32>
    %42 = arith.addf %39, %41 : vector<16x128xf32>
    %c0_33 = arith.constant 0 : index
    %c0_34 = arith.constant 0 : index
    %43 = vector.load %arg14[%c0_33, %c0_34] : memref<16x128xf32, #tpu.memory_space<vmem>>, vector<16x128xf32>
    tpu.vector_store %arg14[%c0_33, %c0_34], %42 {strides = array<i32>} : memref<16x128xf32, #tpu.memory_space<vmem>>, vector<16x128xf32>,
    return
  }
  func.func @transform_0(%arg0: i32) -> (i32, i32) {
    %c0_i32 = arith.constant 0 : i32
    %c0_i32_0 = arith.constant 0 : i32
    return %arg0, %c0_i32 : i32, i32
  }
  func.func @transform_1(%arg0: i32) -> (i32, i32) {
    %c0_i32 = arith.constant 0 : i32
    %c0_i32_0 = arith.constant 0 : i32
    %c0_i32_1 = arith.constant 0 : i32
    return %c0_i32, %c0_i32_0 : i32, i32
  }
  func.func @transform_2(%arg0: i32) -> (i32, i32) {
    %c0_i32 = arith.constant 0 : i32
    %c0_i32_0 = arith.constant 0 : i32
    %c0_i32_1 = arith.constant 0 : i32
    return %c0_i32, %c0_i32_0 : i32, i32
  }
  func.func @transform_3(%arg0: i32) -> (i32, i32) {
    %c0_i32 = arith.constant 0 : i32
    %c0_i32_0 = arith.constant 0 : i32
    %c0_i32_1 = arith.constant 0 : i32
    return %c0_i32, %c0_i32_0 : i32, i32
  }
  func.func @transform_4(%arg0: i32) -> (i32, i32) {
    %c0_i32 = arith.constant 0 : i32
    %c0_i32_0 = arith.constant 0 : i32
    %c0_i32_1 = arith.constant 0 : i32
    return %c0_i32, %c0_i32_0 : i32, i32
  }
  func.func @transform_5(%arg0: i32) -> (i32, i32) {
    %c0_i32 = arith.constant 0 : i32
    %c0_i32_0 = arith.constant 0 : i32
    %c0_i32_1 = arith.constant 0 : i32
    return %c0_i32, %c0_i32_0 : i32, i32
  }
  func.func @transform_6(%arg0: i32) -> (i32, i32) {
    %c0_i32 = arith.constant 0 : i32
    %c0_i32_0 = arith.constant 0 : i32
    %c0_i32_1 = arith.constant 0 : i32
    return %c0_i32, %c0_i32_0 : i32, i32
  }
  func.func @transform_7(%arg0: i32) -> (i32, i32) {
    %c0_i32 = arith.constant 0 : i32
    %c0_i32_0 = arith.constant 0 : i32
    %c0_i32_1 = arith.constant 0 : i32
    return %c0_i32, %c0_i32_0 : i32, i32
  }
  func.func @transform_8(%arg0: i32) -> (i32, i32) {
    %c0_i32 = arith.constant 0 : i32
    %c0_i32_0 = arith.constant 0 : i32
    %c0_i32_1 = arith.constant 0 : i32
    return %c0_i32, %c0_i32_0 : i32, i32
  }
  func.func @transform_9(%arg0: i32) -> (i32, i32) {
    %c0_i32 = arith.constant 0 : i32
    %c0_i32_0 = arith.constant 0 : i32
    %c0_i32_1 = arith.constant 0 : i32
    return %c0_i32, %c0_i32_0 : i32, i32
  }
  func.func @transform_10(%arg0: i32) -> (i32, i32) {
    %c0_i32 = arith.constant 0 : i32
    %c0_i32_0 = arith.constant 0 : i32
    %c0_i32_1 = arith.constant 0 : i32
    return %c0_i32, %c0_i32_0 : i32, i32
  }
  func.func @transform_11(%arg0: i32) -> (i32, i32) {
    %c0_i32 = arith.constant 0 : i32
    %c0_i32_0 = arith.constant 0 : i32
    %c0_i32_1 = arith.constant 0 : i32
    return %c0_i32, %c0_i32_0 : i32, i32
  }
  func.func @transform_12(%arg0: i32) -> (i32, i32) {
    %c0_i32 = arith.constant 0 : i32
    %c0_i32_0 = arith.constant 0 : i32
    %c0_i32_1 = arith.constant 0 : i32
    return %c0_i32, %c0_i32_0 : i32, i32
  }
  func.func @transform_13(%arg0: i32) -> (i32, i32) {
    %c0_i32 = arith.constant 0 : i32
    %c0_i32_0 = arith.constant 0 : i32
    return %arg0, %c0_i32 : i32, i32
  }
}

</mosaic_0001>

<bundles_post_ra>
// kernel: ligand_projection.1
= control target key start
LH: loop header
LB: loop body
LE: loop exit
PB: predicated region body
PF: predicated region fallthrough
CT: control target
= control target key end

     0   :  { %18 = vsyncpa [#allocation3], 0  ;;  %s3151_s25 = smov [#allocation2]   ;;  %s3696_s0 = inlined_call_operand.vmem [shape: f32[16,768], index: 0, kind: input, shape index: {}]   ;;  %s3697_s1 = inlined_call_operand.hbm [shape: bf16[768,384], index: 1, kind: input, shape index: {}]   ;;  %s3698_s2 = inlined_call_operand.vmem [shape: f32[1,384], index: 2, kind: input, shape index: {}]   ;;  %s3699_s3 = inlined_call_operand.vmem [shape: bf16[384,192], index: 3, kind: input, shape index: {}]   ;;  %s3700_s4 = inlined_call_operand.vmem [shape: f32[1,192], index: 4, kind: input, shape index: {}]   ;;  %s3701_s5 = inlined_call_operand.vmem [shape: bf16[192,192], index: 5, kind: input, shape index: {}]   ;;  %s3702_s6 = inlined_call_operand.vmem [shape: f32[1,192], index: 6, kind: input, shape index: {}]   ;;  %s3703_s7 = inlined_call_operand.vmem [shape: bf16[192,192], index: 7, kind: input, shape index: {}]   ;;  %s3704_s8 = inlined_call_operand.vmem [shape: f32[1,192], index: 8, kind: input, shape index: {}]   ;;  %s3705_s9 = inlined_call_operand.vmem [shape: bf16[192,128], index: 9, kind: input, shape index: {}]   ;;  %s3706_s10 = inlined_call_operand.vmem [shape: f32[1,128], index: 10, kind: input, shape index: {}]   ;;  %s3707_s11 = inlined_call_operand.vmem [shape: bf16[128,128], index: 11, kind: input, shape index: {}]   ;;  %s3708_s12 = inlined_call_operand.vmem [shape: f32[1,128], index: 12, kind: input, shape index: {}]   ;;  %s3709_s13 = inlined_call_operand.vmem [shape: f32[16,128], index: 13, kind: output, shape index: {}]  }
   0x1   :  { %s26_s26 = sshll.u32 %s3151_s25, 4  ;;  %s3127_s29 = scalar_lea.hbm %s3697_s1, 18432  ;;  %s27_s26 = int_to_ptr.vmem [resolvable:$true] %s26_s26 }
   0x2   :  { %p3128_p0 = scmp.ne.s32.totalorder %s3697_s1, %s3127_s29  ;;  %p3131_p1 = scmp.lt.u32.totalorder %s3127_s29, %s3697_s1 }
   0x4   :  { %p3133_p2 = pnand %p3131_p1, %p3128_p0 }
   0x6   :  { %3136 = shalt.err (!%p3133_p2)
}
   0x7   :  { %s3137_s17 = scalar_lea.vmem %s27_s26, 18432  ;;  %p3142_p4 = scmp.lt.s32.totalorder %s27_s26, %s27_s26 }
   0x8   :  { %p3138_p3 = scmp.ne.s32.totalorder %s27_s26, %s3137_s17  ;;  %p3143_p5 = scmp.lt.s32.totalorder %s3137_s17, %s3137_s17 }
   0xa   :  { %p3144_p6 = por %p3143_p5, %p3142_p4 }
   0xc   :  { %p3145_p7 = pnand %p3144_p6, %p3138_p3 }
   0xe   :  { %3148 = shalt.err (!%p3145_p7)
}
   0xf   :  { %s3152_s18 = smov 192   ;;  %s3153_s19 = smov 12  }
  0x10   :  { %32 = dma.hbm_to_vmem [thread:$0]  %s3697_s1, 18432, %s27_s26, [#allocation3], %s3152_s18, %s3152_s18, %s3153_s19  }
  0x11   :  { %3149 = dma.done.wait [#allocation3], 18432  }
  0x12   :  { %3150 = vsyncadd [#allocation3], 4294948864  ;;  %v2771_v0 = vld [vmem:[#allocation2 + $0x4] ss:$12 sps:$4 sm:$0xff]   ;;  %v2773_v1 = vld [vmem:[#allocation2] ss:$12 sps:$4 sm:$0xff]  }
  0x13   :  { %1054 = vmatprep.subr.bf16.mxu0 %v2771_v0  ;;  %v2774_v2 = vld [vmem:[#allocation2 + $0x1c] ss:$12 sps:$4 sm:$0xff]   ;;  %v2776_v3 = vld [vmem:[#allocation2 + $0x18] ss:$12 sps:$4 sm:$0xff]   ;;  %v2777_v4 = vld [vmem:[#allocation2 + $0x34] ss:$12 sps:$4 sm:$0xff]  }
  0x14   :  { %1055 = vmatpush1.bf16.msra.mxu0 %v2773_v1  ;;  %v2779_v5 = vld [vmem:[#allocation2 + $0x30] ss:$12 sps:$4 sm:$0xff]   ;;  %v2780_v6 = vld [vmem:[#allocation2 + $0x4c] ss:$12 sps:$4 sm:$0xff]   ;;  %v2782_v7 = vld [vmem:[#allocation2 + $0x48] ss:$12 sps:$4 sm:$0xff]  }
  0x15   :  { %1056 = vmatprep.subr.bf16.mxu0 %v2774_v2  ;;  %v2783_v8 = vld [vmem:[#allocation2 + $0x64] ss:$12 sps:$4 sm:$0xff]   ;;  %v2785_v9 = vld [vmem:[#allocation2 + $0x60] ss:$12 sps:$4 sm:$0xff]   ;;  %v2786_v10 = vld [vmem:[#allocation2 + $0x7c] ss:$12 sps:$4 sm:$0xff]  }
  0x16   :  { %v2788_v11 = vld [vmem:[#allocation2 + $0x78] ss:$12 sps:$4 sm:$0xff]   ;;  %v2789_v12 = vld [vmem:[#allocation2 + $0x94] ss:$12 sps:$4 sm:$0xff]   ;;  %v60_v13 = vld [vmem:[%s3696_s0 + $0x8] sm:$0xff]  ;;  %vm1859_vm0 = vcmask 523264  }
  0x17   :  { %v66_v14 = vld [vmem:[%s3696_s0 + $0x38] sm:$0xff]  ;;  %v2822_v18 = vld [vmem:[#allocation2 + $0xc8] ss:$12 sps:$4 sm:$0xff]   ;;  %v2795_v21 = vld [vmem:[#allocation2 + $0xc4] ss:$12 sps:$4 sm:$0xff]   ;;  %vm3156_vm1 = vmmov 0  }
  0x18   :  { %1057 = vmatpush1.bf16.msra.mxu0 %v2776_v3  ;;  %v72_v15 = vpack.c.bf16 %v66_v14, %v60_v13  ;;  %v2791_v16 = vld [vmem:[#allocation2 + $0x90] ss:$12 sps:$4 sm:$0xff]   ;;  %v2792_v17 = vld [vmem:[#allocation2 + $0xac] ss:$12 sps:$4 sm:$0xff]   ;;  %v2823_v19 = vld [vmem:[#allocation2 + $0x8] ss:$12 sps:$4 sm:$0xff]   ;;  %2650 = vmatprep.subr.bf16.mxu1 %v2822_v18 }
  0x19   :  { %1058 = vmatprep.subr.bf16.mxu0 %v2777_v4  ;;  %v2794_v20 = vld [vmem:[#allocation2 + $0xa8] ss:$12 sps:$4 sm:$0xff]   ;;  %2651 = vmatpush3.bf16.msra.mxu1 %v2823_v19  ;;  %v2827_v22 = vld [vmem:[#allocation2 + $0xe0] ss:$12 sps:$4 sm:$0xff]   ;;  %v2832_v26 = vld [vmem:[#allocation2 + $0xf8] ss:$12 sps:$4 sm:$0xff]  }
  0x1a   :  { %1086 = vmatprep.mubr.bf16.mxu0 %v72_v15  ;;  %1215 = vmatprep.mubr.bf16.mxu1 %v72_v15  ;;  %v2828_v23 = vld [vmem:[#allocation2 + $0x20] ss:$12 sps:$4 sm:$0xff]   ;;  %v2798_v25 = vld [vmem:[#allocation2 + $0xdc] ss:$12 sps:$4 sm:$0xff]   ;;  %v2833_v27 = vld [vmem:[#allocation2 + $0x38] ss:$12 sps:$4 sm:$0xff]  }
  0x1b   :  { %v2797_v24 = vld [vmem:[#allocation2 + $0xc0] ss:$12 sps:$4 sm:$0xff]   ;;  %2652 = vmatprep.subr.bf16.mxu1 %v2827_v22  ;;  %v2800_v28 = vld [vmem:[#allocation2 + $0xd8] ss:$12 sps:$4 sm:$0xff]   ;;  %v2837_v29 = vld [vmem:[#allocation2 + $0x110] ss:$12 sps:$4 sm:$0xff]  }
  0x1c   :  { %1059 = vmatpush1.bf16.msra.mxu0 %v2779_v5  ;;  %v2838_v30 = vld [vmem:[#allocation2 + $0x50] ss:$12 sps:$4 sm:$0xff]   ;;  %v2801_v31 = vld [vmem:[#allocation2 + $0xf4] ss:$12 sps:$4 sm:$0xff]   ;;  %v2804_v35 = vld [vmem:[#allocation2 + $0x10c] ss:$12 sps:$4 sm:$0xff]  }
  0x1d   :  { %1060 = vmatprep.subr.bf16.mxu0 %v2780_v6  ;;  %2653 = vmatpush3.bf16.msra.mxu1 %v2828_v23  ;;  %v2803_v32 = vld [vmem:[#allocation2 + $0xf0] ss:$12 sps:$4 sm:$0xff]   ;;  %v2842_v33 = vld [vmem:[#allocation2 + $0x128] ss:$12 sps:$4 sm:$0xff]   ;;  %v2847_v36 = vld [vmem:[#allocation2 + $0x140] ss:$12 sps:$4 sm:$0xff]  }
  0x1e   :  { %2654 = vmatprep.subr.bf16.mxu1 %v2832_v26  ;;  %v2843_v34 = vld [vmem:[#allocation2 + $0x68] ss:$12 sps:$4 sm:$0xff]   ;;  %v2807_v38 = vld [vmem:[#allocation2 + $0x124] ss:$12 sps:$4 sm:$0xff]   ;;  %v2848_v39 = vld [vmem:[#allocation2 + $0x80] ss:$12 sps:$4 sm:$0xff]  }
  0x1f   :  { %v2806_v37 = vld [vmem:[#allocation2 + $0x108] ss:$12 sps:$4 sm:$0xff]   ;;  %v2852_v40 = vld [vmem:[#allocation2 + $0x158] ss:$12 sps:$4 sm:$0xff]   ;;  %v2809_v41 = vld [vmem:[#allocation2 + $0x120] ss:$12 sps:$4 sm:$0xff]  }
  0x20   :  { %1061 = vmatpush1.bf16.msra.mxu0 %v2782_v7  ;;  %v2810_v42 = vld [vmem:[#allocation2 + $0x13c] ss:$12 sps:$4 sm:$0xff]   ;;  %v2853_v43 = vld [vmem:[#allocation2 + $0x98] ss:$12 sps:$4 sm:$0xff]   ;;  %v2813_v46 = vld [vmem:[#allocation2 + $0x154] ss:$12 sps:$4 sm:$0xff]  }
  0x21   :  { %1062 = vmatprep.subr.bf16.mxu0 %v2783_v8  ;;  %2655 = vmatpush3.bf16.msra.mxu1 %v2833_v27  ;;  %v2857_v44 = vld [vmem:[#allocation2 + $0x170] ss:$12 sps:$4 sm:$0xff]   ;;  %v2812_v45 = vld [vmem:[#allocation2 + $0x138] ss:$12 sps:$4 sm:$0xff]   ;;  %v2862_v48 = vld [vmem:[#allocation2 + $0x248] ss:$12 sps:$4 sm:$0xff]  }
  0x22   :  { %2656 = vmatprep.subr.bf16.mxu1 %v2837_v29  ;;  %v2858_v47 = vld [vmem:[#allocation2 + $0xb0] ss:$12 sps:$4 sm:$0xff]   ;;  %v59_v50 = vld [vmem:[%s3696_s0] sm:$0xff]  ;;  %v2816_v52 = vld [vmem:[#allocation2 + $0x16c] ss:$12 sps:$4 sm:$0xff]  }
  0x23   :  { %v2815_v49 = vld [vmem:[#allocation2 + $0x150] ss:$12 sps:$4 sm:$0xff]   ;;  %v2863_v53 = vld [vmem:[#allocation2 + $0x188] ss:$12 sps:$4 sm:$0xff]   ;;  %v2867_v55 = vld [vmem:[#allocation2 + $0x260] ss:$12 sps:$4 sm:$0xff]  }
  0x24   :  { %1063 = vmatpush1.bf16.msra.mxu0 %v2785_v9  ;;  %v65_v51 = vld [vmem:[%s3696_s0 + $0x30] sm:$0xff]  ;;  %v2868_v57 = vld [vmem:[#allocation2 + $0x1a0] ss:$12 sps:$4 sm:$0xff]   ;;  %v2872_v59 = vld [vmem:[#allocation2 + $0x278] ss:$12 sps:$4 sm:$0xff]  }
  0x25   :  { %1064 = vmatprep.subr.bf16.mxu0 %v2786_v10  ;;  %2657 = vmatpush3.bf16.msra.mxu1 %v2838_v30  ;;  %v71_v54 = vpack.c.bf16 %v65_v51, %v59_v50  ;;  %v2818_v56 = vld [vmem:[#allocation2 + $0x168] ss:$12 sps:$4 sm:$0xff]   ;;  %v2821_v58 = vld [vmem:[#allocation2 + $0x184] ss:$12 sps:$4 sm:$0xff]   ;;  %v2819_v60 = vld [vmem:[#allocation2 + $0x180] ss:$12 sps:$4 sm:$0xff]  }
  0x26   :  { %2658 = vmatprep.subr.bf16.mxu1 %v2842_v33  ;;  %v2826_v61 = vld [vmem:[#allocation2 + $0x19c] ss:$12 sps:$4 sm:$0xff]   ;;  %v2873_v62 = vld [vmem:[#allocation2 + $0x1b8] ss:$12 sps:$4 sm:$0xff]   ;;  %v2831_v1 = vld [vmem:[#allocation2 + $0x1b4] ss:$12 sps:$4 sm:$0xff]  }
  0x27   :  { %v2877_v63 = vld [vmem:[#allocation2 + $0x290] ss:$12 sps:$4 sm:$0xff]   ;;  %v2824_v0 = vld [vmem:[#allocation2 + $0x198] ss:$12 sps:$4 sm:$0xff]   ;;  %v2882_v3 = vld [vmem:[#allocation2 + $0x2a8] ss:$12 sps:$4 sm:$0xff]  }
  0x28   :  { %1065 = vmatpush1.bf16.msra.mxu0 %v2788_v11  ;;  %v2878_v2 = vld [vmem:[#allocation2 + $0x1d0] ss:$12 sps:$4 sm:$0xff]   ;;  %v2836_v5 = vld [vmem:[#allocation2 + $0x1cc] ss:$12 sps:$4 sm:$0xff]   ;;  %v2883_v6 = vld [vmem:[#allocation2 + $0x1e8] ss:$12 sps:$4 sm:$0xff]  }
  0x29   :  { %1066 = vmatprep.subr.bf16.mxu0 %v2789_v12  ;;  %2659 = vmatpush3.bf16.msra.mxu1 %v2843_v34  ;;  %v2829_v4 = vld [vmem:[#allocation2 + $0x1b0] ss:$12 sps:$4 sm:$0xff]   ;;  %v2887_v7 = vld [vmem:[#allocation2 + $0x2c0] ss:$12 sps:$4 sm:$0xff]   ;;  %v2834_v8 = vld [vmem:[#allocation2 + $0x1c8] ss:$12 sps:$4 sm:$0xff]  }
  0x2a   :  { %2660 = vmatprep.subr.bf16.mxu1 %v2847_v36  ;;  %v2841_v9 = vld [vmem:[#allocation2 + $0x1e4] ss:$12 sps:$4 sm:$0xff]   ;;  %v2888_v10 = vld [vmem:[#allocation2 + $0x200] ss:$12 sps:$4 sm:$0xff]   ;;  %v62_v12 = vld [vmem:[%s3696_s0 + $0x18] sm:$0xff] }
  0x2b   :  { %v2892_v11 = vld [vmem:[#allocation2 + $0x2d8] ss:$12 sps:$4 sm:$0xff]   ;;  %v68_v13 = vld [vmem:[%s3696_s0 + $0x48] sm:$0xff]  ;;  %v2897_v18 = vld [vmem:[#allocation2 + $0x2f0] ss:$12 sps:$4 sm:$0xff]  }
  0x2c   :  { %1067 = vmatpush1.bf16.msra.mxu0 %v2791_v16  ;;  %v74_v14 = vpack.c.bf16 %v68_v13, %v62_v12  ;;  %v2839_v15 = vld [vmem:[#allocation2 + $0x1e0] ss:$12 sps:$4 sm:$0xff]   ;;  %v2846_v16 = vld [vmem:[#allocation2 + $0x1fc] ss:$12 sps:$4 sm:$0xff]   ;;  %v2844_v19 = vld [vmem:[#allocation2 + $0x1f8] ss:$12 sps:$4 sm:$0xff]  }
  0x2d   :  { %1068 = vmatprep.subr.bf16.mxu0 %v2792_v17  ;;  %2661 = vmatpush3.bf16.msra.mxu1 %v2848_v39  ;;  %v2893_v17 = vld [vmem:[#allocation2 + $0x218] ss:$12 sps:$4 sm:$0xff]   ;;  %v61_v22 = vld [vmem:[%s3696_s0 + $0x10] sm:$0xff]  ;;  %v2907_v29 = vld [vmem:[#allocation2 + $0x3e0] ss:$12 sps:$4 sm:$0xff]  }
  0x2e   :  { %2662 = vmatprep.subr.bf16.mxu1 %v2852_v40  ;;  %v67_v23 = vld [vmem:[%s3696_s0 + $0x40] sm:$0xff]  ;;  %v2903_v27 = vld [vmem:[#allocation2 + $0x308] ss:$12 sps:$4 sm:$0xff]   ;;  %v2918_v40 = vld [vmem:[#allocation2 + $0x350] ss:$12 sps:$4 sm:$0xff]  }
  0x2f   :  { %v3263_v26 = vpack.c.bf16 %v67_v23, %v61_v22  ;;  %v2854_v30 = vld [vmem:[#allocation2 + $0x228] ss:$12 sps:$4 sm:$0xff]   ;;  %v2912_v33 = vld [vmem:[#allocation2 + $0x3f8] ss:$12 sps:$4 sm:$0xff]   ;;  %v2859_v34 = vld [vmem:[#allocation2 + $0x240] ss:$12 sps:$4 sm:$0xff]  }
  0x30   :  { %1069 = vmatpush1.bf16.msra.mxu0 %v2794_v20  ;;  %v2898_v20 = vld [vmem:[#allocation2 + $0x230] ss:$12 sps:$4 sm:$0xff]   ;;  %v2913_v36 = vld [vmem:[#allocation2 + $0x338] ss:$12 sps:$4 sm:$0xff]   ;;  %v2871_v39 = vld [vmem:[#allocation2 + $0x274] ss:$12 sps:$4 sm:$0xff]  }
  0x31   :  { %1070 = vmatprep.subr.bf16.mxu0 %v2795_v21  ;;  %2663 = vmatpush3.bf16.msra.mxu1 %v2853_v43  ;;  %v2851_v21 = vld [vmem:[#allocation2 + $0x214] ss:$12 sps:$4 sm:$0xff]   ;;  %v2876_v43 = vld [vmem:[#allocation2 + $0x28c] ss:$12 sps:$4 sm:$0xff]   ;;  %v2881_v50 = vld [vmem:[#allocation2 + $0x2a4] ss:$12 sps:$4 sm:$0xff]  }
  0x32   :  { %2664 = vmatprep.subr.bf16.mxu1 %v2857_v44  ;;  %v2923_v44 = vld [vmem:[#allocation2 + $0x368] ss:$12 sps:$4 sm:$0xff]   ;;  %v2928_v51 = vld [vmem:[#allocation2 + $0x380] ss:$12 sps:$4 sm:$0xff]   ;;  %v2904_v12 = vld [vmem:[#allocation2 + $0x318] ss:$12 sps:$4 sm:$0xff]  }
  0x33   :  { %v2911_v13 = vld [vmem:[#allocation2 + $0x334] ss:$12 sps:$4 sm:$0xff]   ;;  %v2977_v23 = vld [vmem:[%s3699_s3 + $0x44] ss:$8 sps:$4 sm:$0xff]  }
  0x34   :  { %1071 = vmatpush1.bf16.msra.mxu0 %v2797_v24  ;;  %v2902_v24 = vld [vmem:[#allocation2 + $0x3c8] ss:$12 sps:$4 sm:$0xff]  }
  0x35   :  { %1072 = vmatprep.subr.bf16.mxu0 %v2798_v25  ;;  %2665 = vmatpush3.bf16.msra.mxu1 %v2858_v47  ;;  %v2849_v25 = vld [vmem:[#allocation2 + $0x210] ss:$12 sps:$4 sm:$0xff]   ;;  %v2975_v22 = vld [vmem:[%s3699_s3 + $0x40] ss:$8 sps:$4 sm:$0xff]  }
  0x36   :  { %2672 = vmatprep.subr.bf16.mxu1 %v2862_v48  ;;  %v70_v47 = vld [vmem:[%s3696_s0 + $0x58] sm:$0xff] }
  0x38   :  { %1073 = vmatpush1.bf16.msra.mxu0 %v2800_v28  ;;  %1216 = vmatmul.mubr.bf16.vlgmr.msra.gmra.mrb[0].mxu1 %v71_v54  ;;  %v2856_v28 = vld [vmem:[#allocation2 + $0x22c] ss:$12 sps:$4 sm:$0xff]  }
  0x39   :  { %1074 = vmatprep.subr.bf16.mxu0 %v2801_v31  ;;  %2673 = vmatpush3.bf16.msra.mxu1 %v2863_v53  ;;  %v2861_v31 = vld [vmem:[#allocation2 + $0x244] ss:$12 sps:$4 sm:$0xff]   ;;  %v2879_v53 = vld [vmem:[#allocation2 + $0x2a0] ss:$12 sps:$4 sm:$0xff]  }
  0x3a   :  { %2674 = vmatprep.subr.bf16.mxu1 %v2867_v55  ;;  %1256 = vmatprep.mubr.bf16.mxu1 %v74_v14  ;;  %v2933_v55 = vld [vmem:[#allocation2 + $0x398] ss:$12 sps:$4 sm:$0xff]  }
  0x3c   :  { %1075 = vmatpush1.bf16.msra.mxu0 %v2803_v32  ;;  %v2908_v32 = vld [vmem:[#allocation2 + $0x320] ss:$12 sps:$4 sm:$0xff]  }
  0x3d   :  { %1076 = vmatprep.subr.bf16.mxu0 %v2804_v35  ;;  %2675 = vmatpush3.bf16.msra.mxu1 %v2868_v57  ;;  %v2866_v35 = vld [vmem:[#allocation2 + $0x25c] ss:$12 sps:$4 sm:$0xff]   ;;  %v2884_v57 = vld [vmem:[#allocation2 + $0x2b8] ss:$12 sps:$4 sm:$0xff]  }
  0x3e   :  { %2676 = vmatprep.subr.bf16.mxu1 %v2872_v59  ;;  %v63_v59 = vld [vmem:[%s3696_s0 + $0x20] sm:$0xff] }
  0x40   :  { %1077 = vmatpush1.bf16.msra.mxu0 %v2806_v37  ;;  %v2917_v37 = vld [vmem:[#allocation2 + $0x410] ss:$12 sps:$4 sm:$0xff]  }
  0x41   :  { %1078 = vmatprep.subr.bf16.mxu0 %v2807_v38  ;;  %2677 = vmatpush3.bf16.msra.mxu1 %v2873_v62  ;;  %v2864_v38 = vld [vmem:[#allocation2 + $0x258] ss:$12 sps:$4 sm:$0xff]  }
  0x42   :  { %2678 = vmatprep.subr.bf16.mxu1 %v2877_v63  ;;  %v2965_v62 = vld [vmem:[%s3699_s3 + $0x4] ss:$8 sps:$4 sm:$0xff]   ;;  %v2889_v63 = vld [vmem:[#allocation2 + $0x2d0] ss:$12 sps:$4 sm:$0xff]  }
  0x44   :  { %1079 = vmatpush1.bf16.msra.mxu0 %v2809_v41  ;;  %v2922_v41 = vld [vmem:[#allocation2 + $0x428] ss:$12 sps:$4 sm:$0xff]  }
  0x45   :  { %1080 = vmatprep.subr.bf16.mxu0 %v2810_v42  ;;  %2679 = vmatpush3.bf16.msra.mxu1 %v2878_v2  ;;  %v2869_v42 = vld [vmem:[#allocation2 + $0x270] ss:$12 sps:$4 sm:$0xff]   ;;  %v2963_v2 = vld [vmem:[%s3699_s3] ss:$8 sps:$4 sm:$0xff]  }
  0x46   :  { %2680 = vmatprep.subr.bf16.mxu1 %v2882_v3  ;;  %v2968_v3 = vld [vmem:[%s3699_s3 + $0x14] ss:$8 sps:$4 sm:$0xff]  }
  0x48   :  { %1081 = vmatpush1.bf16.msra.mxu0 %v2812_v45  ;;  %v2927_v45 = vld [vmem:[#allocation2 + $0x440] ss:$12 sps:$4 sm:$0xff]  }
  0x49   :  { %1082 = vmatprep.subr.bf16.mxu0 %v2813_v46  ;;  %2681 = vmatpush3.bf16.msra.mxu1 %v2883_v6  ;;  %v64_v46 = vld [vmem:[%s3696_s0 + $0x28] sm:$0xff]  ;;  %v2901_v6 = vld [vmem:[#allocation2 + $0x304] ss:$12 sps:$4 sm:$0xff]  }
  0x4a   :  { %2682 = vmatprep.subr.bf16.mxu1 %v2887_v7  ;;  %v76_v48 = vpack.c.bf16 %v70_v47, %v64_v46  ;;  %v2971_v7 = vld [vmem:[%s3699_s3 + $0x24] ss:$8 sps:$4 sm:$0xff]   ;;  %v2981_v46 = vld [vmem:[%s3699_s3 + $0x60] ss:$8 sps:$4 sm:$0xff]  }
  0x4b   :  { %v2983_v47 = vld [vmem:[%s3699_s3 + $0x64] ss:$8 sps:$4 sm:$0xff]  }
  0x4c   :  { %1083 = vmatpush1.bf16.msra.mxu0 %v2815_v49  ;;  %v2874_v49 = vld [vmem:[#allocation2 + $0x288] ss:$12 sps:$4 sm:$0xff]  }
  0x4d   :  { %1084 = vmatprep.subr.bf16.mxu0 %v2816_v52  ;;  %2683 = vmatpush3.bf16.msra.mxu1 %v2888_v10  ;;  %v2932_v52 = vld [vmem:[#allocation2 + $0x458] ss:$12 sps:$4 sm:$0xff]   ;;  %v2969_v10 = vld [vmem:[%s3699_s3 + $0x20] ss:$8 sps:$4 sm:$0xff]  }
  0x4e   :  { %2684 = vmatprep.subr.bf16.mxu1 %v2892_v11  ;;  %v2974_v11 = vld [vmem:[%s3699_s3 + $0x34] ss:$8 sps:$4 sm:$0xff]  }
  0x50   :  { %1085 = vmatpush1.bf16.msra.mxu0 %v2818_v56  ;;  %v2937_v56 = vld [vmem:[#allocation2 + $0x470] ss:$12 sps:$4 sm:$0xff]  }
  0x51   :  { %1097 = vmatprep.subr.bf16.mxu0 %v2821_v58  ;;  %2685 = vmatpush3.bf16.msra.mxu1 %v2893_v17  ;;  %v2938_v58 = vld [vmem:[#allocation2 + $0x3b0] ss:$12 sps:$4 sm:$0xff]   ;;  %v2914_v17 = vld [vmem:[#allocation2 + $0x348] ss:$12 sps:$4 sm:$0xff]  }
  0x52   :  { %2686 = vmatprep.subr.bf16.mxu1 %v2897_v18  ;;  %v2921_v18 = vld [vmem:[#allocation2 + $0x364] ss:$12 sps:$4 sm:$0xff]  }
  0x53   :  { %1087 = vmatmul.mubr.bf16.vlgmr.msra.gmra.mrb[0].mxu0 %v71_v54  ;;  %v2886_v54 = vld [vmem:[#allocation2 + $0x2bc] ss:$12 sps:$4 sm:$0xff]  }
  0x54   :  { %1098 = vmatpush1.bf16.msra.mxu0 %v2819_v60  ;;  %1129 = vmatprep.mubr.bf16.mxu0 %v74_v14  ;;  %v69_v60 = vld [vmem:[%s3696_s0 + $0x50] sm:$0xff] }
  0x55   :  { %1099 = vmatprep.subr.bf16.mxu0 %v2826_v61  ;;  %2687 = vmatpush3.bf16.msra.mxu1 %v2898_v20  ;;  %v2891_v61 = vld [vmem:[#allocation2 + $0x2d4] ss:$12 sps:$4 sm:$0xff]   ;;  %v2972_v14 = vld [vmem:[%s3699_s3 + $0x30] ss:$8 sps:$4 sm:$0xff]   ;;  %v2926_v20 = vld [vmem:[#allocation2 + $0x37c] ss:$12 sps:$4 sm:$0xff]  }
  0x56   :  { %2694 = vmatprep.subr.bf16.mxu1 %v2902_v24  ;;  %v2931_v24 = vld [vmem:[#allocation2 + $0x394] ss:$12 sps:$4 sm:$0xff]  }
  0x58   :  { %1100 = vmatpush1.bf16.msra.mxu0 %v2824_v0  ;;  %1257 = vmatmul.mubr.bf16.vlgmr.msra.gmra.mrb[4].mxu1 %v3263_v26  ;;  %v3281_v0 = vpack.c.bf16 %v69_v60, %v63_v59  ;;  %v2999_v59 = vld [vmem:[%s3699_s3 + $0xc0] ss:$8 sps:$4 sm:$0xff]   ;;  %v3004_v60 = vld [vmem:[%s3699_s3 + $0xd4] ss:$8 sps:$4 sm:$0xff]  }
  0x59   :  { %1101 = vmatprep.subr.bf16.mxu0 %v2831_v1  ;;  %2695 = vmatpush3.bf16.msra.mxu1 %v2903_v27  ;;  %v2896_v1 = vld [vmem:[#allocation2 + $0x2ec] ss:$12 sps:$4 sm:$0xff]   ;;  %v2934_v27 = vld [vmem:[#allocation2 + $0x3a8] ss:$12 sps:$4 sm:$0xff]  }
  0x5a   :  { %2696 = vmatprep.subr.bf16.mxu1 %v2907_v29  ;;  %1297 = vmatprep.mubr.bf16.mxu1 %v76_v48  ;;  %v2939_v29 = vld [vmem:[#allocation2 + $0x3c0] ss:$12 sps:$4 sm:$0xff]  }
  0x5c   :  { %1102 = vmatpush1.bf16.msra.mxu0 %v2829_v4  ;;  %v2894_v4 = vld [vmem:[#allocation2 + $0x2e8] ss:$12 sps:$4 sm:$0xff]  }
  0x5d   :  { %1103 = vmatprep.subr.bf16.mxu0 %v2836_v5  ;;  %2697 = vmatpush3.bf16.msra.mxu1 %v2908_v32  ;;  %v2966_v5 = vld [vmem:[%s3699_s3 + $0x10] ss:$8 sps:$4 sm:$0xff]   ;;  %v2947_v32 = vld [vmem:[#allocation2 + $0x3f4] ss:$12 sps:$4 sm:$0xff]  }
  0x5e   :  { %2698 = vmatprep.subr.bf16.mxu1 %v2912_v33  ;;  %v2945_v33 = vld [vmem:[#allocation2 + $0x3f0] ss:$12 sps:$4 sm:$0xff]  }
  0x60   :  { %1104 = vmatpush1.bf16.msra.mxu0 %v2834_v8  ;;  %v2899_v8 = vld [vmem:[#allocation2 + $0x300] ss:$12 sps:$4 sm:$0xff]  }
  0x61   :  { %1105 = vmatprep.subr.bf16.mxu0 %v2841_v9  ;;  %2699 = vmatpush3.bf16.msra.mxu1 %v2913_v36  ;;  %v2906_v9 = vld [vmem:[#allocation2 + $0x31c] ss:$12 sps:$4 sm:$0xff]   ;;  %v2953_v36 = vld [vmem:[#allocation2 + $0x424] ss:$12 sps:$4 sm:$0xff]  }
  0x62   :  { %2700 = vmatprep.subr.bf16.mxu1 %v2917_v37  ;;  %v2951_v37 = vld [vmem:[#allocation2 + $0x420] ss:$12 sps:$4 sm:$0xff]  }
  0x64   :  { %1106 = vmatpush1.bf16.msra.mxu0 %v2839_v15  ;;  %v2909_v15 = vld [vmem:[#allocation2 + $0x330] ss:$12 sps:$4 sm:$0xff]  }
  0x65   :  { %1107 = vmatprep.subr.bf16.mxu0 %v2846_v16  ;;  %2701 = vmatpush3.bf16.msra.mxu1 %v2918_v40  ;;  %v2916_v16 = vld [vmem:[#allocation2 + $0x34c] ss:$12 sps:$4 sm:$0xff]   ;;  %v2980_v40 = vld [vmem:[%s3699_s3 + $0x54] ss:$8 sps:$4 sm:$0xff]  }
  0x66   :  { %2702 = vmatprep.subr.bf16.mxu1 %v2922_v41  ;;  %v2954_v41 = vld [vmem:[#allocation2 + $0x438] ss:$12 sps:$4 sm:$0xff]  }
  0x68   :  { %1108 = vmatpush1.bf16.msra.mxu0 %v2844_v19  ;;  %v2919_v19 = vld [vmem:[#allocation2 + $0x360] ss:$12 sps:$4 sm:$0xff]  }
  0x69   :  { %1109 = vmatprep.subr.bf16.mxu0 %v2851_v21  ;;  %2703 = vmatpush3.bf16.msra.mxu1 %v2923_v44  ;;  %v2924_v21 = vld [vmem:[#allocation2 + $0x378] ss:$12 sps:$4 sm:$0xff]  }
  0x6a   :  { %2704 = vmatprep.subr.bf16.mxu1 %v2927_v45  ;;  %v2962_v44 = vld [vmem:[#allocation2 + $0x46c] ss:$12 sps:$4 sm:$0xff]   ;;  %v2960_v45 = vld [vmem:[#allocation2 + $0x468] ss:$12 sps:$4 sm:$0xff]  }
  0x6c   :  { %1110 = vmatpush1.bf16.msra.mxu0 %v2849_v25  ;;  %v2929_v25 = vld [vmem:[#allocation2 + $0x390] ss:$12 sps:$4 sm:$0xff]  }
  0x6d   :  { %1111 = vmatprep.subr.bf16.mxu0 %v2856_v28  ;;  %2705 = vmatpush3.bf16.msra.mxu1 %v2928_v51  ;;  %v2941_v28 = vld [vmem:[#allocation2 + $0x3c4] ss:$12 sps:$4 sm:$0xff]   ;;  %v2987_v51 = vld [vmem:[%s3699_s3 + $0x80] ss:$8 sps:$4 sm:$0xff]  }
  0x6e   :  { %2706 = vmatprep.subr.bf16.mxu1 %v2932_v52  ;;  %v2992_v52 = vld [vmem:[%s3699_s3 + $0x94] ss:$8 sps:$4 sm:$0xff]  }
  0x70   :  { %1112 = vmatpush1.bf16.msra.mxu0 %v2854_v30  ;;  %v2944_v30 = vld [vmem:[#allocation2 + $0x3dc] ss:$12 sps:$4 sm:$0xff]  }
  0x71   :  { %1113 = vmatprep.subr.bf16.mxu0 %v2861_v31  ;;  %2707 = vmatpush3.bf16.msra.mxu1 %v2933_v55  ;;  %v2942_v31 = vld [vmem:[#allocation2 + $0x3d8] ss:$12 sps:$4 sm:$0xff]   ;;  %v2993_v55 = vld [vmem:[%s3699_s3 + $0xa0] ss:$8 sps:$4 sm:$0xff]  }
  0x72   :  { %2708 = vmatprep.subr.bf16.mxu1 %v2937_v56  ;;  %v2998_v56 = vld [vmem:[%s3699_s3 + $0xb4] ss:$8 sps:$4 sm:$0xff]  }
  0x74   :  { %1114 = vmatpush1.bf16.msra.mxu0 %v2859_v34  ;;  %v2950_v34 = vld [vmem:[#allocation2 + $0x40c] ss:$12 sps:$4 sm:$0xff]  }
  0x75   :  { %1115 = vmatprep.subr.bf16.mxu0 %v2866_v35  ;;  %2709 = vmatpush3.bf16.msra.mxu1 %v2938_v58  ;;  %v2948_v35 = vld [vmem:[#allocation2 + $0x408] ss:$12 sps:$4 sm:$0xff]   ;;  %v3001_v58 = vld [vmem:[%s3699_s3 + $0xc4] ss:$8 sps:$4 sm:$0xff]  }
  0x76   :  { %1615 = vmatprep.subr.bf16.mxu1 %v2965_v62 }
  0x78   :  { %1116 = vmatpush1.bf16.msra.mxu0 %v2864_v38  ;;  %1298 = vmatmul.mubr.bf16.vlgmr.msra.gmra.mrb[8].mxu1 %v3281_v0  ;;  %v2956_v38 = vld [vmem:[#allocation2 + $0x43c] ss:$12 sps:$4 sm:$0xff]  }
  0x79   :  { %1117 = vmatprep.subr.bf16.mxu0 %v2871_v39  ;;  %1616 = vmatpush1.bf16.msra.mxu1 %v2963_v2  ;;  %v2978_v39 = vld [vmem:[%s3699_s3 + $0x50] ss:$8 sps:$4 sm:$0xff]  }
  0x7a   :  { %1617 = vmatprep.subr.bf16.mxu1 %v2968_v3 }
  0x7c   :  { %1118 = vmatpush1.bf16.msra.mxu0 %v2869_v42  ;;  %v2959_v42 = vld [vmem:[#allocation2 + $0x454] ss:$12 sps:$4 sm:$0xff]  }
  0x7d   :  { %1119 = vmatprep.subr.bf16.mxu0 %v2876_v43  ;;  %1618 = vmatpush1.bf16.msra.mxu1 %v2966_v5  ;;  %v2957_v43 = vld [vmem:[#allocation2 + $0x450] ss:$12 sps:$4 sm:$0xff]   ;;  %v3005_v5 = vld [vmem:[%s3699_s3 + $0xe0] ss:$8 sps:$4 sm:$0xff]  }
  0x7e   :  { %1619 = vmatprep.subr.bf16.mxu1 %v2971_v7  ;;  %v3008_v7 = vld [vmem:[%s3699_s3 + $0xf0] ss:$8 sps:$4 sm:$0xff]  }
  0x80   :  { %1120 = vmatpush1.bf16.msra.mxu0 %v2874_v49  ;;  %v2986_v49 = vld [vmem:[%s3699_s3 + $0x74] ss:$8 sps:$4 sm:$0xff]  }
  0x81   :  { %1121 = vmatprep.subr.bf16.mxu0 %v2881_v50  ;;  %1620 = vmatpush1.bf16.msra.mxu1 %v2969_v10  ;;  %v2989_v50 = vld [vmem:[%s3699_s3 + $0x84] ss:$8 sps:$4 sm:$0xff]  }
  0x82   :  { %1621 = vmatprep.subr.bf16.mxu1 %v2974_v11 }
  0x84   :  { %1122 = vmatpush1.bf16.msra.mxu0 %v2879_v53  ;;  %v2990_v53 = vld [vmem:[%s3699_s3 + $0x90] ss:$8 sps:$4 sm:$0xff]  }
  0x85   :  { %1123 = vmatprep.subr.bf16.mxu0 %v2886_v54  ;;  %1622 = vmatpush1.bf16.msra.mxu1 %v2972_v14  ;;  %v2995_v54 = vld [vmem:[%s3699_s3 + $0xa4] ss:$8 sps:$4 sm:$0xff]  }
  0x86   :  { %1623 = vmatprep.subr.bf16.mxu1 %v2977_v23 }
  0x88   :  { %1124 = vmatpush1.bf16.msra.mxu0 %v2884_v57  ;;  %v2996_v57 = vld [vmem:[%s3699_s3 + $0xb0] ss:$8 sps:$4 sm:$0xff]  }
  0x89   :  { %1125 = vmatprep.subr.bf16.mxu0 %v2891_v61  ;;  %1624 = vmatpush1.bf16.msra.mxu1 %v2975_v22  ;;  %v3002_v61 = vld [vmem:[%s3699_s3 + $0xd0] ss:$8 sps:$4 sm:$0xff]  }
  0x8a   :  { %1625 = vmatprep.subr.bf16.mxu1 %v2980_v40 }
  0x8c   :  { %1126 = vmatpush1.bf16.msra.mxu0 %v2889_v63 }
  0x8d   :  { %1127 = vmatprep.subr.bf16.mxu0 %v2896_v1  ;;  %1626 = vmatpush1.bf16.msra.mxu1 %v2978_v39  ;;  %v3052_v39 = vld [vmem:[%s3701_s5 + $0x54] ss:$8 sps:$4 sm:$0xff]  }
  0x8e   :  { %1627 = vmatprep.subr.bf16.mxu1 %v2983_v47 }
  0x90   :  { %1128 = vmatpush1.bf16.msra.mxu0 %v2894_v4  ;;  %v3007_v4 = vld [vmem:[%s3699_s3 + $0xe4] ss:$8 sps:$4 sm:$0xff]  }
  0x91   :  { %1140 = vmatprep.subr.bf16.mxu0 %v2901_v6  ;;  %1628 = vmatpush1.bf16.msra.mxu1 %v2981_v46  ;;  %v3010_v6 = vld [vmem:[%s3699_s3 + $0xf4] ss:$8 sps:$4 sm:$0xff]  }
  0x92   :  { %1629 = vmatprep.subr.bf16.mxu1 %v2986_v49  ;;  %v3058_v49 = vld [vmem:[%s3701_s5 + $0x74] ss:$8 sps:$4 sm:$0xff]  }
  0x93   :  { %1130 = vmatmul.mubr.bf16.vlgmr.msra.gmra.mrb[0].mxu0 %v3263_v26  ;;  %v2936_v26 = vld [vmem:[#allocation2 + $0x3ac] ss:$12 sps:$4 sm:$0xff]  }
  0x94   :  { %1141 = vmatpush1.bf16.msra.mxu0 %v2899_v8  ;;  %1172 = vmatprep.mubr.bf16.mxu0 %v76_v48  ;;  %v2984_v48 = vld [vmem:[%s3699_s3 + $0x70] ss:$8 sps:$4 sm:$0xff]   ;;  %v271_v8 = vlaneseq }
  0x95   :  { %1142 = vmatprep.subr.bf16.mxu0 %v2906_v9  ;;  %1630 = vmatpush1.bf16.msra.mxu1 %v2984_v48  ;;  %v3013_v9 = vld [vmem:[%s3699_s3 + $0x104] ss:$8 sps:$4 sm:$0xff]   ;;  %v3053_v48 = vld [vmem:[%s3701_s5 + $0x60] ss:$8 sps:$4 sm:$0xff]  }
  0x96   :  { %1631 = vmatprep.subr.bf16.mxu1 %v2989_v50  ;;  %v3382_v10 = vshrl.u32 %v271_v8, 7  ;;  %v3056_v50 = vld [vmem:[%s3701_s5 + $0x70] ss:$8 sps:$4 sm:$0xff]  }
  0x98   :  { %1143 = vmatpush1.bf16.msra.mxu0 %v2904_v12  ;;  %v281_v11 = vsub.s32 2, %v3382_v10  ;;  %v3388_v12 = vld [vmem:[%s3698_s2] sm:$0x7] }
  0x99   :  { %1144 = vmatprep.subr.bf16.mxu0 %v2911_v13  ;;  %1632 = vmatpush1.bf16.msra.mxu1 %v2987_v51  ;;  %v3061_v51 = vld [vmem:[%s3701_s5 + $0x84] ss:$8 sps:$4 sm:$0xff]  }
  0x9a   :  { %1633 = vmatprep.subr.bf16.mxu1 %v2992_v52  ;;  %v282_v13 = vrot.slane %v3388_v12, %v281_v11  ;;  %v3059_v52 = vld [vmem:[%s3701_s5 + $0x80] ss:$8 sps:$4 sm:$0xff]   ;;  %v3014_v11 = vld [vmem:[%s3699_s3 + $0x110] ss:$8 sps:$4 sm:$0xff]  }
  0x9c   :  { %1145 = vmatpush1.bf16.msra.mxu0 %v2909_v15 }
  0x9d   :  { %1146 = vmatprep.subr.bf16.mxu0 %v2916_v16  ;;  %1634 = vmatpush1.bf16.msra.mxu1 %v2990_v53  ;;  %v3064_v53 = vld [vmem:[%s3701_s5 + $0x94] ss:$8 sps:$4 sm:$0xff]  }
  0x9e   :  { %1635 = vmatprep.subr.bf16.mxu1 %v2995_v54  ;;  %v3062_v54 = vld [vmem:[%s3701_s5 + $0x90] ss:$8 sps:$4 sm:$0xff]  }
  0xa0   :  { %1147 = vmatpush1.bf16.msra.mxu0 %v2914_v17 }
  0xa1   :  { %1148 = vmatprep.subr.bf16.mxu0 %v2921_v18  ;;  %1636 = vmatpush1.bf16.msra.mxu1 %v2993_v55  ;;  %v3454_v55 = vsub.s32 0, %v3382_v10 }
  0xa2   :  { %1637 = vmatprep.subr.bf16.mxu1 %v2998_v56  ;;  %v3457_v56 = vsub.s32 1, %v3382_v10  ;;  %v3016_v10 = vld [vmem:[%s3699_s3 + $0x114] ss:$8 sps:$4 sm:$0xff]  }
  0xa4   :  { %1149 = vmatpush1.bf16.msra.mxu0 %v2919_v19 }
  0xa5   :  { %1150 = vmatprep.subr.bf16.mxu0 %v2926_v20  ;;  %1638 = vmatpush1.bf16.msra.mxu1 %v2996_v57  ;;  %v274_v57 = vrot.slane %v3388_v12, %v3454_v55 }
  0xa6   :  { %1639 = vmatprep.subr.bf16.mxu1 %v3001_v58  ;;  %v278_v58 = vrot.slane %v3388_v12, %v3457_v56  ;;  %v3154_v12 = vmov 0  }
  0xa8   :  { %1151 = vmatpush1.bf16.msra.mxu0 %v2924_v21 }
  0xa9   :  { %1152 = vmatprep.subr.bf16.mxu0 %v2931_v24  ;;  %1640 = vmatpush1.bf16.msra.mxu1 %v2999_v59  ;;  %v3035_v24 = vld [vmem:[%s3701_s5] ss:$8 sps:$4 sm:$0xff]  }
  0xaa   :  { %1641 = vmatprep.subr.bf16.mxu1 %v3004_v60 }
  0xac   :  { %1153 = vmatpush1.bf16.msra.mxu0 %v2929_v25  ;;  %v3037_v25 = vld [vmem:[%s3701_s5 + $0x4] ss:$8 sps:$4 sm:$0xff]  }
  0xad   :  { %1154 = vmatprep.subr.bf16.mxu0 %v2936_v26  ;;  %1642 = vmatpush1.bf16.msra.mxu1 %v3002_v61  ;;  %v3040_v26 = vld [vmem:[%s3701_s5 + $0x14] ss:$8 sps:$4 sm:$0xff]  }
  0xae   :  { %1643 = vmatprep.subr.bf16.mxu1 %v3007_v4 }
  0xb0   :  { %1155 = vmatpush1.bf16.msra.mxu0 %v2934_v27  ;;  %v3038_v27 = vld [vmem:[%s3701_s5 + $0x10] ss:$8 sps:$4 sm:$0xff]  }
  0xb1   :  { %1156 = vmatprep.subr.bf16.mxu0 %v2941_v28  ;;  %1644 = vmatpush1.bf16.msra.mxu1 %v3005_v5  ;;  %v3043_v28 = vld [vmem:[%s3701_s5 + $0x24] ss:$8 sps:$4 sm:$0xff]  }
  0xb2   :  { %1645 = vmatprep.subr.bf16.mxu1 %v3010_v6 }
  0xb4   :  { %1157 = vmatpush1.bf16.msra.mxu0 %v2939_v29  ;;  %v3041_v29 = vld [vmem:[%s3701_s5 + $0x20] ss:$8 sps:$4 sm:$0xff]  }
  0xb5   :  { %1158 = vmatprep.subr.bf16.mxu0 %v2944_v30  ;;  %1646 = vmatpush1.bf16.msra.mxu1 %v3008_v7  ;;  %v3046_v30 = vld [vmem:[%s3701_s5 + $0x34] ss:$8 sps:$4 sm:$0xff]  }
  0xb6   :  { %1658 = vmatprep.subr.bf16.mxu1 %v3013_v9  ;;  %v3011_v9 = vld [vmem:[%s3699_s3 + $0x100] ss:$8 sps:$4 sm:$0xff]  }
  0xb8   :  { %1159 = vmatpush1.bf16.msra.mxu0 %v2942_v31  ;;  %v3044_v31 = vld [vmem:[%s3701_s5 + $0x30] ss:$8 sps:$4 sm:$0xff]  }
  0xb9   :  { %1160 = vmatprep.subr.bf16.mxu0 %v2947_v32  ;;  %v3049_v32 = vld [vmem:[%s3701_s5 + $0x44] ss:$8 sps:$4 sm:$0xff]  }
  0xbc   :  { %1161 = vmatpush1.bf16.msra.mxu0 %v2945_v33 }
  0xbd   :  { %1162 = vmatprep.subr.bf16.mxu0 %v2950_v34 }
  0xc0   :  { %1163 = vmatpush1.bf16.msra.mxu0 %v2948_v35 }
  0xc1   :  { %1164 = vmatprep.subr.bf16.mxu0 %v2953_v36 }
  0xc4   :  { %1165 = vmatpush1.bf16.msra.mxu0 %v2951_v37  ;;  %v3047_v37 = vld [vmem:[%s3701_s5 + $0x40] ss:$8 sps:$4 sm:$0xff]  }
  0xc5   :  { %1166 = vmatprep.subr.bf16.mxu0 %v2956_v38 }
  0xc8   :  { %1167 = vmatpush1.bf16.msra.mxu0 %v2954_v41 }
  0xc9   :  { %1168 = vmatprep.subr.bf16.mxu0 %v2959_v42 }
  0xcc   :  { %1169 = vmatpush1.bf16.msra.mxu0 %v2957_v43 }
  0xcd   :  { %1170 = vmatprep.subr.bf16.mxu0 %v2962_v44  ;;  %v3050_v44 = vld [vmem:[%s3701_s5 + $0x50] ss:$8 sps:$4 sm:$0xff]  }
  0xd0   :  { %1171 = vmatpush1.bf16.msra.mxu0 %v2960_v45  ;;  %v3055_v45 = vld [vmem:[%s3701_s5 + $0x64] ss:$8 sps:$4 sm:$0xff]  }
  0xd1   :  { %1863 = vmatprep.subr.bf16.mxu0 %v3037_v25  ;;  %v3067_v25 = vld [vmem:[%s3701_s5 + $0xa4] ss:$8 sps:$4 sm:$0xff]  }
  0xd3   :  { %1173 = vmatmul.mubr.bf16.vlgmr.msra.gmra.mrb[0].mxu0 %v3281_v0 }
  0xd4   :  { %1864 = vmatpush1.bf16.msra.mxu0 %v3035_v24  ;;  %v3032_v24 = vld [vmem:[%s3699_s3 + $0x170] ss:$8 sps:$4 sm:$0xff]  }
  0xd5   :  { %1865 = vmatprep.subr.bf16.mxu0 %v3040_v26  ;;  %v3065_v26 = vld [vmem:[%s3701_s5 + $0xa0] ss:$8 sps:$4 sm:$0xff]  }
  0xd8   :  { %1866 = vmatpush1.bf16.msra.mxu0 %v3038_v27  ;;  %v3070_v27 = vld [vmem:[%s3701_s5 + $0xb4] ss:$8 sps:$4 sm:$0xff]  }
  0xd9   :  { %1867 = vmatprep.subr.bf16.mxu0 %v3043_v28  ;;  %v3068_v28 = vld [vmem:[%s3701_s5 + $0xb0] ss:$8 sps:$4 sm:$0xff]  }
  0xdc   :  { %1868 = vmatpush1.bf16.msra.mxu0 %v3041_v29  ;;  %v3071_v29 = vld [vmem:[%s3703_s7] ss:$8 sps:$4 sm:$0xff]  }
  0xdd   :  { %1869 = vmatprep.subr.bf16.mxu0 %v3046_v30  ;;  %v3073_v30 = vld [vmem:[%s3703_s7 + $0x4] ss:$8 sps:$4 sm:$0xff]  }
  0xe0   :  { %1870 = vmatpush1.bf16.msra.mxu0 %v3044_v31  ;;  %v3076_v31 = vld [vmem:[%s3703_s7 + $0x14] ss:$8 sps:$4 sm:$0xff]  }
  0xe1   :  { %1871 = vmatprep.subr.bf16.mxu0 %v3049_v32  ;;  %v3074_v32 = vld [vmem:[%s3703_s7 + $0x10] ss:$8 sps:$4 sm:$0xff]  }
  0xe4   :  { %1872 = vmatpush1.bf16.msra.mxu0 %v3047_v37  ;;  %v3085_v37 = vld [vmem:[%s3703_s7 + $0x44] ss:$8 sps:$4 sm:$0xff]  }
  0xe5   :  { %1873 = vmatprep.subr.bf16.mxu0 %v3052_v39  ;;  %v3088_v39 = vld [vmem:[%s3703_s7 + $0x54] ss:$8 sps:$4 sm:$0xff]  }
  0xe8   :  { %1874 = vmatpush1.bf16.msra.mxu0 %v3050_v44  ;;  %v3092_v44 = vld [vmem:[%s3703_s7 + $0x70] ss:$8 sps:$4 sm:$0xff]  }
  0xe9   :  { %1875 = vmatprep.subr.bf16.mxu0 %v3055_v45  ;;  %v3097_v45 = vld [vmem:[%s3703_s7 + $0x84] ss:$8 sps:$4 sm:$0xff]  }
  0xec   :  { %1876 = vmatpush1.bf16.msra.mxu0 %v3053_v48  ;;  %v3098_v48 = vld [vmem:[%s3703_s7 + $0x90] ss:$8 sps:$4 sm:$0xff]  }
  0xed   :  { %1877 = vmatprep.subr.bf16.mxu0 %v3058_v49  ;;  %v1363_v49 = vld [vmem:[%s3700_s4] sm:$0x3] }
  0xf0   :  { %1878 = vmatpush1.bf16.msra.mxu0 %v3056_v50  ;;  %v1368_v50 = vrot.slane %v1363_v49, %v3454_v55 }
  0xf1   :  { %1879 = vmatprep.subr.bf16.mxu0 %v3061_v51 }
  0xf4   :  { %1880 = vmatpush1.bf16.msra.mxu0 %v3059_v52  ;;  %v1372_v52 = vrot.slane %v1363_v49, %v3457_v56 }
  0xf5   :  { %1881 = vmatprep.subr.bf16.mxu0 %v3064_v53 }
  0xf8   :  { %1882 = vmatpush1.bf16.msra.mxu0 %v3062_v54 }
  0xf9   :  { %1883 = vmatprep.subr.bf16.mxu0 %v3067_v25 }
  0xfc   :  { %1884 = vmatpush1.bf16.msra.mxu0 %v3065_v26 }
  0xfd   :  { %1885 = vmatprep.subr.bf16.mxu0 %v3070_v27 }
 0x100   :  { %1886 = vmatpush1.bf16.msra.mxu0 %v3068_v28 }
 0x101   :  { %2222 = vmatprep.subr.bf16.mxu0 %v3154_v12 }
 0x10b   :  { %v2666_v62 = vpop.f32.mrb[0].mxu1 }
 0x10c   :  { %v2667_v63 = vpop.f32.mrb[1].mxu1 }
 0x10d   :  { %v2668_v0 = vadd.f32 %v2667_v63, %v2666_v62  ;;  %v2669_v1 = vpop.f32.mrb[2].mxu1 }
 0x10e   :  { %v2670_v2 = vpop.f32.mrb[3].mxu1 }
 0x10f   :  { %v2671_v3 = vadd.f32 %v2670_v2, %v2669_v1  ;;  %v1218_v14 = vadd.f32 %v2668_v0, %v282_v13 }
 0x111   :  { %v1221_v17 = vadd.f32 %v2671_v3, %v282_v13  ;;  %v3019_v13 = vld [vmem:[%s3699_s3 + $0x124] ss:$8 sps:$4 sm:$0xff]  }
 0x12b   :  { %v2688_v15 = vpop.f32.mrb[4].mxu1 }
 0x12c   :  { %v2689_v16 = vpop.f32.mrb[5].mxu1 }
 0x12d   :  { %v2690_v18 = vadd.f32 %v2689_v16, %v2688_v15  ;;  %v2691_v19 = vpop.f32.mrb[6].mxu1  ;;  %v3022_v15 = vld [vmem:[%s3699_s3 + $0x134] ss:$8 sps:$4 sm:$0xff]   ;;  %v3020_v16 = vld [vmem:[%s3699_s3 + $0x130] ss:$8 sps:$4 sm:$0xff]  }
 0x12e   :  { %v2692_v20 = vpop.f32.mrb[7].mxu1 }
 0x12f   :  { %v1259_v21 = vadd.f32 %v2690_v18, %v1218_v14  ;;  %v2693_v22 = vadd.f32 %v2692_v20, %v2691_v19  ;;  %v3017_v14 = vld [vmem:[%s3699_s3 + $0x120] ss:$8 sps:$4 sm:$0xff]   ;;  %v3028_v19 = vld [vmem:[%s3699_s3 + $0x154] ss:$8 sps:$4 sm:$0xff]   ;;  %v3026_v20 = vld [vmem:[%s3699_s3 + $0x150] ss:$8 sps:$4 sm:$0xff]  }
 0x130   :  { %v3023_v18 = vld [vmem:[%s3699_s3 + $0x140] ss:$8 sps:$4 sm:$0xff]  }
 0x131   :  { %v1262_v23 = vadd.f32 %v2693_v22, %v1221_v17  ;;  %v3025_v17 = vld [vmem:[%s3699_s3 + $0x144] ss:$8 sps:$4 sm:$0xff]   ;;  %v3029_v22 = vld [vmem:[%s3699_s3 + $0x160] ss:$8 sps:$4 sm:$0xff]  }
 0x14b   :  { %v2710_v33 = vpop.f32.mrb[8].mxu1 }
 0x14c   :  { %v2711_v34 = vpop.f32.mrb[9].mxu1 }
 0x14d   :  { %v2712_v35 = vadd.f32 %v2711_v34, %v2710_v33  ;;  %v2713_v36 = vpop.f32.mrb[10].mxu1  ;;  %v3079_v33 = vld [vmem:[%s3703_s7 + $0x24] ss:$8 sps:$4 sm:$0xff]   ;;  %v3077_v34 = vld [vmem:[%s3703_s7 + $0x20] ss:$8 sps:$4 sm:$0xff]  }
 0x14e   :  { %v2714_v38 = vpop.f32.mrb[11].mxu1 }
 0x14f   :  { %v1300_v40 = vadd.f32 %v2712_v35, %v1259_v21  ;;  %v2715_v41 = vadd.f32 %v2714_v38, %v2713_v36  ;;  %v3031_v21 = vld [vmem:[%s3699_s3 + $0x164] ss:$8 sps:$4 sm:$0xff]   ;;  %v3082_v35 = vld [vmem:[%s3703_s7 + $0x34] ss:$8 sps:$4 sm:$0xff]   ;;  %v3080_v36 = vld [vmem:[%s3703_s7 + $0x30] ss:$8 sps:$4 sm:$0xff]  }
 0x150   :  { %v3083_v38 = vld [vmem:[%s3703_s7 + $0x40] ss:$8 sps:$4 sm:$0xff]  }
 0x151   :  { %v1308_v42 = vmax.f32 %v1300_v40, 0.0  ;;  %v1303_v43 = vadd.f32 %v2715_v41, %v1262_v23  ;;  %v3034_v23 = vld [vmem:[%s3699_s3 + $0x174] ss:$8 sps:$4 sm:$0xff]   ;;  %v3086_v40 = vld [vmem:[%s3703_s7 + $0x50] ss:$8 sps:$4 sm:$0xff]  }
 0x152   :  { %v3091_v41 = vld [vmem:[%s3703_s7 + $0x64] ss:$8 sps:$4 sm:$0xff]  }
 0x153   :  { %v1311_v46 = vmax.f32 %v1303_v43, 0.0  ;;  %v3094_v43 = vld [vmem:[%s3703_s7 + $0x74] ss:$8 sps:$4 sm:$0xff]  }
 0x155   :  { %v3430_v47 = vpack.c.bf16 %v1311_v46, %v1308_v42  ;;  %v3089_v42 = vld [vmem:[%s3703_s7 + $0x60] ss:$8 sps:$4 sm:$0xff]  }
 0x156   :  { %v3095_v46 = vld [vmem:[%s3703_s7 + $0x80] ss:$8 sps:$4 sm:$0xff]  }
 0x1a6   :  { %v1174_v59 = vpop.f32.mrb[0].mxu0 }
 0x1a7   :  { %v2745_v60 = vadd.f32 %v1174_v59, %v274_v57  ;;  %v1176_v61 = vpop.f32.mrb[1].mxu0 }
 0x1a8   :  { %v2746_v62 = vadd.f32 %v1176_v61, %v278_v58  ;;  %v1178_v63 = vpop.f32.mrb[2].mxu0 }
 0x1a9   :  { %v2747_v0 = vadd.f32 %v1178_v63, %v274_v57  ;;  %v1180_v1 = vpop.f32.mrb[3].mxu0  ;;  %v1306_v3 = vmax.f32 %v2745_v60, 0.0 }
 0x1aa   :  { %v2748_v2 = vadd.f32 %v1180_v1, %v278_v58  ;;  %v1307_v5 = vmax.f32 %v2746_v62, 0.0  ;;  %v3101_v1 = vld [vmem:[%s3703_s7 + $0xa0] ss:$8 sps:$4 sm:$0xff]  }
 0x1ab   :  { %v1309_v4 = vmax.f32 %v2747_v0, 0.0  ;;  %v3103_v0 = vld [vmem:[%s3703_s7 + $0xa4] ss:$8 sps:$4 sm:$0xff]  }
 0x1ac   :  { %v1310_v6 = vmax.f32 %v2748_v2, 0.0  ;;  %v3106_v2 = vld [vmem:[%s3703_s7 + $0xb4] ss:$8 sps:$4 sm:$0xff]  }
 0x1ad   :  { %v1312_v7 = vpack.c.bf16 %v1309_v4, %v1306_v3  ;;  %v3104_v3 = vld [vmem:[%s3703_s7 + $0xb0] ss:$8 sps:$4 sm:$0xff]   ;;  %v3107_v4 = vld [vmem:[%s3705_s9] sm:$0xff]  }
 0x1ae   :  { %v1313_v8 = vpack.c.bf16 %v1310_v6, %v1307_v5  ;;  %v3108_v5 = vld [vmem:[%s3705_s9 + $0x8] sm:$0xff]   ;;  %v3109_v6 = vld [vmem:[%s3705_s9 + $0x10] sm:$0xff]  }
 0x1b0   :  { %1647 = vmatprep.mubr.bf16.mxu1 %v1313_v8  ;;  %v3111_v8 = vld [vmem:[%s3705_s9 + $0x20] sm:$0xff]  }
 0x1b1   :  { %1648 = vmatmul.mubr.bf16.vlgmr.msra.gmra.mrb[12].mxu1 %v1312_v7  ;;  %v3110_v7 = vld [vmem:[%s3705_s9 + $0x18] sm:$0xff]  }
 0x1b2   :  { %1659 = vmatpush1.bf16.msra.mxu1 %v3011_v9  ;;  %1690 = vmatprep.mubr.bf16.mxu1 %v3154_v12  ;;  %v3112_v9 = vld [vmem:[%s3705_s9 + $0x28] sm:$0xff]  }
 0x1b3   :  { %1660 = vmatprep.subr.bf16.mxu1 %v3016_v10  ;;  %v3113_v10 = vld [vmem:[%s3705_s9 + $0x30] sm:$0xff]  }
 0x1b6   :  { %1661 = vmatpush1.bf16.msra.mxu1 %v3014_v11  ;;  %v3114_v11 = vld [vmem:[%s3705_s9 + $0x38] sm:$0xff]  }
 0x1b7   :  { %1662 = vmatprep.subr.bf16.mxu1 %v3019_v13  ;;  %v3115_v13 = vld [vmem:[%s3705_s9 + $0x40] sm:$0xff]  }
 0x1ba   :  { %1663 = vmatpush1.bf16.msra.mxu1 %v3017_v14  ;;  %v3116_v14 = vld [vmem:[%s3705_s9 + $0x48] sm:$0xff]  }
 0x1bb   :  { %1664 = vmatprep.subr.bf16.mxu1 %v3022_v15  ;;  %v1727_v15 = vld [vmem:[%s3702_s6] sm:$0x3] }
 0x1be   :  { %1665 = vmatpush1.bf16.msra.mxu1 %v3020_v16  ;;  %v1732_v16 = vrot.slane %v1727_v15, %v3454_v55 }
 0x1bf   :  { %1666 = vmatprep.subr.bf16.mxu1 %v3025_v17  ;;  %v1736_v17 = vrot.slane %v1727_v15, %v3457_v56 }
 0x1c2   :  { %1667 = vmatpush1.bf16.msra.mxu1 %v3023_v18 }
 0x1c3   :  { %1668 = vmatprep.subr.bf16.mxu1 %v3028_v19 }
 0x1c6   :  { %1669 = vmatpush1.bf16.msra.mxu1 %v3026_v20 }
 0x1c7   :  { %1670 = vmatprep.subr.bf16.mxu1 %v3031_v21 }
 0x1ca   :  { %1671 = vmatpush1.bf16.msra.mxu1 %v3029_v22 }
 0x1cb   :  { %1672 = vmatprep.subr.bf16.mxu1 %v3034_v23 }
 0x1ce   :  { %1673 = vmatpush1.bf16.msra.mxu1 %v3032_v24 }
 0x1cf   :  { %2071 = vmatprep.subr.bf16.mxu1 %v3073_v30 }
 0x1d1   :  { %1691 = vmatmul.mubr.bf16.vlgmr.msra.gmra.mrb[12].mxu1 %v3430_v47  ;;  %v3100_v47 = vld [vmem:[%s3703_s7 + $0x94] ss:$8 sps:$4 sm:$0xff]  }
 0x1d2   :  { %2072 = vmatpush1.bf16.msra.mxu1 %v3071_v29 }
 0x1d3   :  { %2073 = vmatprep.subr.bf16.mxu1 %v3076_v31 }
 0x1d6   :  { %2074 = vmatpush1.bf16.msra.mxu1 %v3074_v32  ;;  %v3117_v32 = vld [vmem:[%s3705_s9 + $0x50] sm:$0xff]  }
 0x1d7   :  { %2075 = vmatprep.subr.bf16.mxu1 %v3079_v33  ;;  %v3118_v33 = vld [vmem:[%s3705_s9 + $0x58] sm:$0xff]  }
 0x1da   :  { %2076 = vmatpush1.bf16.msra.mxu1 %v3077_v34  ;;  %v3119_v34 = vld [vmem:[%s3707_s11] sm:$0xff]  }
 0x1db   :  { %2077 = vmatprep.subr.bf16.mxu1 %v3082_v35  ;;  %v3155_v35 = vmov 0.0  }
 0x1de   :  { %2078 = vmatpush1.bf16.msra.mxu1 %v3080_v36  ;;  %v3120_v36 = vld [vmem:[%s3707_s11 + $0x8] sm:$0xff]  }
 0x1df   :  { %2079 = vmatprep.subr.bf16.mxu1 %v3085_v37  ;;  %v3122_v37 = vld [vmem:[%s3707_s11 + $0x18] sm:$0xff]  }
 0x1e2   :  { %2080 = vmatpush1.bf16.msra.mxu1 %v3083_v38  ;;  %v3123_v38 = vld [vmem:[%s3707_s11 + $0x20] sm:$0xff]  }
 0x1e3   :  { %2081 = vmatprep.subr.bf16.mxu1 %v3088_v39  ;;  %v3124_v39 = vld [vmem:[%s3707_s11 + $0x28] sm:$0xff]  }
 0x1e6   :  { %2082 = vmatpush1.bf16.msra.mxu1 %v3086_v40  ;;  %v1936_v40 = vld [vmem:[%s3704_s8] sm:$0x3] }
 0x1e7   :  { %2083 = vmatprep.subr.bf16.mxu1 %v3091_v41  ;;  %v1941_v41 = vrot.slane %v1936_v40, %v3454_v55  ;;  %v3126_v55 = vld [vmem:[%s3707_s11 + $0x38] sm:$0xff]  }
 0x1ea   :  { %2084 = vmatpush1.bf16.msra.mxu1 %v3089_v42 }
 0x1eb   :  { %2085 = vmatprep.subr.bf16.mxu1 %v3094_v43  ;;  %v1945_v43 = vrot.slane %v1936_v40, %v3457_v56  ;;  %v2627_v56 = vld [vmem:[%s3706_s10] ss:$0 sm:$0xff] }
 0x1ee   :  { %2086 = vmatpush1.bf16.msra.mxu1 %v3092_v44 }
 0x1ef   :  { %2087 = vmatprep.subr.bf16.mxu1 %v3097_v45 }
 0x1f2   :  { %2088 = vmatpush1.bf16.msra.mxu1 %v3095_v46 }
 0x1f3   :  { %2089 = vmatprep.subr.bf16.mxu1 %v3100_v47 }
 0x1f6   :  { %2090 = vmatpush1.bf16.msra.mxu1 %v3098_v48 }
 0x1f7   :  { %2091 = vmatprep.subr.bf16.mxu1 %v3103_v0 }
 0x1fa   :  { %2092 = vmatpush1.bf16.msra.mxu1 %v3101_v1  ;;  %v2641_v1 = vld [vmem:[%s3708_s12] ss:$0 sm:$0xff] }
 0x1fb   :  { %2093 = vmatprep.subr.bf16.mxu1 %v3106_v2 }
 0x1fe   :  { %2094 = vmatpush1.bf16.msra.mxu1 %v3104_v3 }
 0x1ff   :  { %2725 = vmatprep.subr.bf16.mxu1 %v3155_v35 }
 0x2a4   :  { %v1692_v51 = vpop.f32.mrb[12].mxu1 }
 0x2a5   :  { %v1694_v53 = vpop.f32.mrb[13].mxu1  ;;  %v2749_v57 = vadd.f32 %v1692_v51, %v1368_v50 }
 0x2a6   :  { %v1696_v54 = vpop.f32.mrb[14].mxu1  ;;  %v2750_v60 = vadd.f32 %v1694_v53, %v1372_v52  ;;  %v3125_v53 = vld [vmem:[%s3707_s11 + $0x30] sm:$0xff]  }
 0x2a7   :  { %v2751_v58 = vadd.f32 %v1696_v54, %v1368_v50  ;;  %v1698_v59 = vpop.f32.mrb[15].mxu1 }
 0x2a8   :  { %v2752_v61 = vadd.f32 %v1698_v59, %v1372_v52 }
 0x2a9   :  { %v1701_v62 = vpack.c.bf16 %v2751_v58, %v2749_v57 }
 0x2aa   :  { %v1702_v63 = vpack.c.bf16 %v2752_v61, %v2750_v60 }
 0x2ac   :  { %2601 = vmatprep.mubr.msk.bf16.mxu0 %vm1859_vm0, %v1702_v63 }
 0x2ad   :  { %1896 = vmatmul.mubr.bf16.vlgmr.msra.gmra.mrb[4].mxu0 %v1701_v62 }
 0x2ae   :  { %2223 = vmatpush1.bf16.msra.mxu0 %v3107_v4 }
 0x2af   :  { %2224 = vmatprep.subr.bf16.mxu0 %v3154_v12 }
 0x2b2   :  { %2225 = vmatpush1.bf16.msra.mxu0 %v3108_v5 }
 0x2b3   :  { %2226 = vmatprep.subr.bf16.mxu0 %v3154_v12 }
 0x2b6   :  { %2227 = vmatpush1.bf16.msra.mxu0 %v3109_v6 }
 0x2b7   :  { %2228 = vmatprep.subr.bf16.mxu0 %v3154_v12 }
 0x2ba   :  { %2229 = vmatpush1.bf16.msra.mxu0 %v3110_v7 }
 0x2bb   :  { %2230 = vmatprep.subr.bf16.mxu0 %v3154_v12 }
 0x2be   :  { %2231 = vmatpush1.bf16.msra.mxu0 %v3111_v8 }
 0x2bf   :  { %2232 = vmatprep.subr.bf16.mxu0 %v3154_v12 }
 0x2c2   :  { %2233 = vmatpush1.bf16.msra.mxu0 %v3112_v9 }
 0x2c3   :  { %2234 = vmatprep.subr.bf16.mxu0 %v3154_v12 }
 0x2c6   :  { %2235 = vmatpush1.bf16.msra.mxu0 %v3113_v10 }
 0x2c7   :  { %2236 = vmatprep.subr.bf16.mxu0 %v3154_v12 }
 0x2ca   :  { %2237 = vmatpush1.bf16.msra.mxu0 %v3114_v11 }
 0x2cb   :  { %2238 = vmatprep.subr.bf16.mxu0 %v3154_v12 }
 0x2ce   :  { %2239 = vmatpush1.bf16.msra.mxu0 %v3115_v13 }
 0x2cf   :  { %2240 = vmatprep.subr.bf16.mxu0 %v3154_v12 }
 0x2d2   :  { %2241 = vmatpush1.bf16.msra.mxu0 %v3116_v14 }
 0x2d3   :  { %2242 = vmatprep.subr.bf16.mxu0 %v3154_v12 }
 0x2d6   :  { %2243 = vmatpush1.bf16.msra.mxu0 %v3117_v32 }
 0x2d7   :  { %2244 = vmatprep.subr.bf16.mxu0 %v3154_v12  ;;  %v3121_v12 = vld [vmem:[%s3707_s11 + $0x10] sm:$0xff]  }
 0x2da   :  { %2245 = vmatpush1.bf16.msra.mxu0 %v3118_v33 }
 0x380   :  { %v1897_v18 = vpop.f32.mrb[4].mxu0 }
 0x381   :  { %v1898_v19 = vadd.f32 %v1897_v18, %v1732_v16  ;;  %v1899_v20 = vpop.f32.mrb[5].mxu0 }
 0x382   :  { %v1900_v21 = vadd.f32 %v1899_v20, %v1736_v17  ;;  %v1901_v22 = vpop.f32.mrb[6].mxu0 }
 0x383   :  { %v1902_v23 = vadd.f32 %v1901_v22, %v1732_v16  ;;  %v1903_v24 = vpop.f32.mrb[7].mxu0  ;;  %v1906_v26 = vmax.f32 %v1898_v19, 0.0 }
 0x384   :  { %v1904_v25 = vadd.f32 %v1903_v24, %v1736_v17  ;;  %v1907_v28 = vmax.f32 %v1900_v21, 0.0 }
 0x385   :  { %v1908_v27 = vmax.f32 %v1902_v23, 0.0 }
 0x386   :  { %v1909_v29 = vmax.f32 %v1904_v25, 0.0 }
 0x387   :  { %v1910_v30 = vpack.c.bf16 %v1908_v27, %v1906_v26 }
 0x388   :  { %v1911_v31 = vpack.c.bf16 %v1909_v29, %v1907_v28 }
 0x38a   :  { %2626 = vmatprep.mubr.msk.bf16.mxu1 %vm1859_vm0, %v1911_v31 }
 0x38b   :  { %2104 = vmatmul.mubr.bf16.vlgmr.msra.gmra.mrb[16].mxu1 %v1910_v30 }
 0x38c   :  { %2726 = vmatpush3.bf16.msra.mxu1 %v3119_v34  ;;  %2741 = vmatprep.mubr.msk.bf16.mxu1 %vm3156_vm1, %v3155_v35 }
 0x38d   :  { %2727 = vmatprep.subr.bf16.mxu1 %v3155_v35 }
 0x390   :  { %2728 = vmatpush3.bf16.msra.mxu1 %v3120_v36 }
 0x391   :  { %2729 = vmatprep.subr.bf16.mxu1 %v3155_v35 }
 0x394   :  { %2730 = vmatpush3.bf16.msra.mxu1 %v3121_v12 }
 0x395   :  { %2731 = vmatprep.subr.bf16.mxu1 %v3155_v35 }
 0x398   :  { %2732 = vmatpush3.bf16.msra.mxu1 %v3122_v37 }
 0x399   :  { %2733 = vmatprep.subr.bf16.mxu1 %v3155_v35 }
 0x39c   :  { %2734 = vmatpush3.bf16.msra.mxu1 %v3123_v38 }
 0x39d   :  { %2735 = vmatprep.subr.bf16.mxu1 %v3155_v35 }
 0x3a0   :  { %2736 = vmatpush3.bf16.msra.mxu1 %v3124_v39 }
 0x3a1   :  { %2737 = vmatprep.subr.bf16.mxu1 %v3155_v35 }
 0x3a4   :  { %2738 = vmatpush3.bf16.msra.mxu1 %v3125_v53 }
 0x3a5   :  { %2739 = vmatprep.subr.bf16.mxu1 %v3155_v35 }
 0x3a8   :  { %2740 = vmatpush3.bf16.msra.mxu1 %v3126_v55 }
 0x45e   :  { %v2105_v42 = vpop.f32.mrb[16].mxu1 }
 0x45f   :  { %v2107_v44 = vpop.f32.mrb[17].mxu1  ;;  %v2106_v46 = vadd.f32 %v2105_v42, %v1941_v41 }
 0x460   :  { %v2109_v45 = vpop.f32.mrb[18].mxu1  ;;  %v2108_v49 = vadd.f32 %v2107_v44, %v1945_v43 }
 0x461   :  { %v2110_v47 = vadd.f32 %v2109_v45, %v1941_v41  ;;  %v2111_v48 = vpop.f32.mrb[19].mxu1 }
 0x462   :  { %v2112_v50 = vadd.f32 %v2111_v48, %v1945_v43 }
 0x463   :  { %v2114_v51 = vpack.c.bf16 %v2110_v47, %v2106_v46 }
 0x464   :  { %v2115_v52 = vpack.c.bf16 %v2112_v50, %v2108_v49 }
 0x466   :  { %2640 = vmatprep.mubr.msk.bf16.mxu0 %vm1859_vm0, %v2115_v52 }
 0x467   :  { %2255 = vmatmul.mubr.bf16.vlgmr.msra.gmra.mrb[8].mxu0 %v2114_v51 }
 0x53a   :  { %v2256_v54 = vpop.f32.mrb[8].mxu0 }
 0x53b   :  { %v2257_v57 = vadd.f32 %v2627_v56, %v2256_v54  ;;  %v2258_v58 = vpop.f32.mrb[9].mxu0 }
 0x53c   :  { %v2259_v59 = vpop.f32.mrb[10].mxu0 }
 0x53d   :  { %v2260_v60 = vadd.f32 %v2627_v56, %v2259_v59  ;;  %v2261_v61 = vpop.f32.mrb[11].mxu0  ;;  %v2263_v62 = vmax.f32 %v2257_v57, 0.0 }
 0x53f   :  { %v2264_v63 = vmax.f32 %v2260_v60, 0.0 }
 0x541   :  { %v2265_v0 = vpack.c.bf16 %v2264_v63, %v2263_v62 }
 0x543   :  { %2742 = vmatmul.mubr.bf16.vlgmr.msra.gmra.mrb[20].mxu1 %v2265_v0 }
 0x616   :  { %v2371_v2 = vpop.f32.mrb[20].mxu1 }
 0x617   :  { %v2372_v3 = vadd.f32 %v2641_v1, %v2371_v2  ;;  %v2743_v4 = vpop.f32.mrb[21].mxu1 }
 0x618   :  { %v2374_v5 = vpop.f32.mrb[22].mxu1 }
 0x619   :  { %2378 = vst [vmem:[%s3709_s13] sm:$0xff] %v2372_v3  ;;  %v2375_v6 = vadd.f32 %v2641_v1, %v2374_v5  ;;  %v2744_v7 = vpop.f32.mrb[23].mxu1 }
 0x61b   :  { %2379 = vst [vmem:[%s3709_s13 + $0x8] sm:$0xff] %v2375_v6 }
 0x61c   :  { %2384 = vsyncpa [#allocation3], 1 }

</bundles_post_ra>
